<compile_context>
chip_gen: v6e
topology: v6e:2x2x1
jax: 0.10.0
libtpu: 0.0.40
codegen_flags: <defaults>
</compile_context>

<pallas_src>
import jax
import jax.numpy as jnp
from jax.experimental import pallas as pl
from jax.experimental.pallas import tpu as pltpu


def _round_up(x, m):
    return (x + m - 1) // m * m


def _leaky_relu(x):
    # nn.LeakyReLU(0.01): 2 VPU ops (max + scale), no cmp/select.
    return jnp.maximum(x, 0.01 * x)


def _disc_kernel(
    scal_ref,                     # SMEM (3,) f32: [gamma, reward_out_b, value_out_b]
    s_ref, ns_ref,                # (TB, TK) f32 activation tiles (batch, K streamed)
    w1cat_ref, vw1_ref,           # (TK, 512) / (TK, 256) bf16 layer-1 weight blocks
    b1cat_ref, vb1_ref,           # (1, 512) / (1, 256) f32 layer-1 biases
    rw2_ref, rb2_ref, rw3_ref, rb3_ref, rwo_ref,   # reward layers 2-4 (resident)
    vw2_ref, vb2_ref, vw3_ref, vb3_ref, vwo_ref,   # value  layers 2-4 (resident)
    out_ref,                      # (1, TB) f32, lane-dense
    acc_s_ref, acc_ns_ref,        # VMEM scratch: layer-1 pre-activations (f32)
):
    k = pl.program_id(1)
    nk = pl.num_programs(1)

    @pl.when(k == 0)
    def _():
        acc_s_ref[...] = jnp.zeros_like(acc_s_ref)
        acc_ns_ref[...] = jnp.zeros_like(acc_ns_ref)

    # ---- layer 1, K-tiled -------------------------------------------------
    # State rows hit the fused [reward_l1 | value_l1] weights (one MXU pass for
    # both branches); next_state rows hit value_l1 only.
    s_blk = s_ref[...].astype(jnp.bfloat16)
    ns_blk = ns_ref[...].astype(jnp.bfloat16)
    acc_s_ref[...] += jnp.dot(s_blk, w1cat_ref[...],
                              preferred_element_type=jnp.float32)
    acc_ns_ref[...] += jnp.dot(ns_blk, vw1_ref[...],
                               preferred_element_type=jnp.float32)

    # ---- layers 2-4 + output on the last K step ----------------------------
    @pl.when(k == nk - 1)
    def _():
        tb = acc_ns_ref.shape[0]
        gamma = scal_ref[0]

        h1 = _leaky_relu(acc_s_ref[...] + b1cat_ref[...])           # (TB, 512)
        h1_r = h1[:, :256]                                           # reward hidden
        h1_vs = h1[:, 256:]                                          # value hidden (s)
        h1_vns = _leaky_relu(acc_ns_ref[...] + vb1_ref[...])         # (TB, 256)

        # Reward branch layers 2-4 (state rows only).
        hr = _leaky_relu(jnp.dot(h1_r.astype(jnp.bfloat16), rw2_ref[...],
                                 preferred_element_type=jnp.float32) + rb2_ref[...])
        hr = _leaky_relu(jnp.dot(hr.astype(jnp.bfloat16), rw3_ref[...],
                                 preferred_element_type=jnp.float32) + rb3_ref[...])
        # 256 -> 1 head: VPU multiply + lane reduction (no N=1 MXU pass).
        reward = jnp.sum(hr * rwo_ref[...], axis=-1) + scal_ref[1]   # (TB,)

        # Value branch layers 2-4 on [state; next_state] stacked at width 256,
        # so each value weight goes through the MXU once for both evaluations.
        hv = jnp.concatenate([h1_vs, h1_vns], axis=0)                # (2*TB, 256)
        hv = _leaky_relu(jnp.dot(hv.astype(jnp.bfloat16), vw2_ref[...],
                                 preferred_element_type=jnp.float32) + vb2_ref[...])
        hv = _leaky_relu(jnp.dot(hv.astype(jnp.bfloat16), vw3_ref[...],
                                 preferred_element_type=jnp.float32) + vb3_ref[...])
        v_s = jnp.sum(hv[:tb] * vwo_ref[...], axis=-1) + scal_ref[2]    # (TB,)
        v_ns = jnp.sum(hv[tb:] * vwo_ref[...], axis=-1) + scal_ref[2]   # (TB,)

        adv = reward + gamma * v_ns - v_s                            # (TB,)
        out_ref[...] = jnp.reshape(adv, (1, tb)).astype(out_ref.dtype)


def _init_linear(key, fan_in, fan_out):
    """Deterministic init mimicking nn.Linear (uniform +/- 1/sqrt(fan_in)).

    Returned weight is (fan_in, fan_out), i.e. already transposed for x @ W.
    """
    kw, kb = jax.random.split(key)
    bound = 1.0 / jnp.sqrt(jnp.float32(fan_in))
    w = jax.random.uniform(kw, (fan_in, fan_out), jnp.float32, -bound, bound)
    b = jax.random.uniform(kb, (1, fan_out), jnp.float32, -bound, bound)
    return w, b


def _k_tiling(d_in):
    """Layer-1 K-tiling: single K step for small D, 2048-wide blocks otherwise."""
    if d_in <= 2048:
        tk = _round_up(d_in, 128)
        return tk, tk
    tk = 2048
    return tk, _round_up(d_in, tk)


class DiscriminatorMLPPallas:
    def __init__(self, state_shape, in_channels=6, key=jax.random.PRNGKey(0)):
        self.state_shape = state_shape
        self.in_channels = in_channels
        d_in = in_channels * state_shape[0] * state_shape[1]
        self.d_in = d_in
        self.TK, self.D_pad = _k_tiling(d_in)

        keys = jax.random.split(key, 8)
        rw1, rb1 = _init_linear(keys[0], d_in, 256)
        rw2, rb2 = _init_linear(keys[1], 256, 512)
        rw3, rb3 = _init_linear(keys[2], 512, 256)
        rwo, rbo = _init_linear(keys[3], 256, 1)
        vw1, vb1 = _init_linear(keys[4], d_in, 256)
        vw2, vb2 = _init_linear(keys[5], 256, 512)
        vw3, vb3 = _init_linear(keys[6], 512, 256)
        vwo, vbo = _init_linear(keys[7], 256, 1)

        # bf16 weight copies, used by BOTH the kernel and the reference so the
        # correctness check stays tight; accumulation is always f32.
        self.rw1 = rw1.astype(jnp.bfloat16); self.rb1 = rb1
        self.rw2 = rw2.astype(jnp.bfloat16); self.rb2 = rb2
        self.rw3 = rw3.astype(jnp.bfloat16); self.rb3 = rb3
        self.vw1 = vw1.astype(jnp.bfloat16); self.vb1 = vb1
        self.vw2 = vw2.astype(jnp.bfloat16); self.vb2 = vb2
        self.vw3 = vw3.astype(jnp.bfloat16); self.vb3 = vb3
        # Heads kept f32, stored as (1, 256) rows for the VPU reduce path.
        self.rwo = rwo.reshape(1, 256)
        self.rbo = rbo.reshape(())
        self.vwo = vwo.reshape(1, 256)
        self.vbo = vbo.reshape(())

        # Fused + K-padded layer-1 weights for the kernel.
        pad_rows = self.D_pad - d_in
        w1cat = jnp.concatenate([self.rw1, self.vw1], axis=1)          # (D, 512) bf16
        self.w1cat_p = jnp.pad(w1cat, ((0, pad_rows), (0, 0)))         # (D_pad, 512)
        self.vw1_p = jnp.pad(self.vw1, ((0, pad_rows), (0, 0)))        # (D_pad, 256)
        self.b1cat = jnp.concatenate([self.rb1, self.vb1], axis=1)     # (1, 512) f32

    # ------------------------------------------------------------------ kernel
    def forward(self, state, next_state, gamma):
        """state/next_state: (B, C, H, W) NCHW f32; gamma: python/jnp scalar."""
        B = state.shape[0]
        D = self.d_in
        s = state.reshape(B, -1).astype(jnp.float32)
        ns = next_state.reshape(B, -1).astype(jnp.float32)

        # Batch tiling: small B -> one padded tile; 128 < B <= 256 -> two
        # 128-row tiles (engages both v7x TCs); large B -> 256-row tiles.
        B8 = _round_up(B, 8)
        if B8 <= 128:
            TB = B8
        elif B8 <= 256:
            TB = 128
        else:
            TB = 256
        B_pad = _round_up(B, TB)

        TK, D_pad = self.TK, self.D_pad
        nk = D_pad // TK

        if B_pad != B or D_pad != D:
            s = jnp.pad(s, ((0, B_pad - B), (0, D_pad - D)))
            ns = jnp.pad(ns, ((0, B_pad - B), (0, D_pad - D)))

        # gamma + head biases as SMEM scalars.
        scal = jnp.stack([jnp.asarray(gamma, jnp.float32), self.rbo, self.vbo])

        resident = (self.b1cat, self.vb1,
                    self.rw2, self.rb2, self.rw3, self.rb3, self.rwo,
                    self.vw2, self.vb2, self.vw3, self.vb3, self.vwo)

        smem_spec = pl.BlockSpec(memory_space=pltpu.MemorySpace.SMEM)
        act_spec = pl.BlockSpec((TB, TK), lambda i, k: (i, k))
        w1cat_spec = pl.BlockSpec((TK, 512), lambda i, k: (k, 0))
        vw1_spec = pl.BlockSpec((TK, 256), lambda i, k: (k, 0))
        # Constant block index -> stay VMEM-resident across all grid steps
        # (bf16 keeps their total footprint ~1 MiB, so default buffering is fine).
        res_specs = [pl.BlockSpec(p.shape, lambda i, k: (0, 0)) for p in resident]
        out_spec = pl.BlockSpec((1, TB), lambda i, k: (0, i))   # lane-dense output

        grid = (B_pad // TB, nk)

        # --- cost estimate / VMEM budget ------------------------------------
        per_row_flops = 2 * (D_pad * 256 + 256 * 512 + 512 * 256 + 256)
        total_flops = 3 * B_pad * per_row_flops     # reward(s) + value(s) + value(ns)
        weight_bytes = (2 * (D_pad * (512 + 256) + 2 * (256 * 512 + 512 * 256))
                        + 4 * (512 + 256 + 512 + 256 + 256 + 512 + 256 + 256 + 2))
        bytes_accessed = 4 * (2 * B_pad * D_pad + B_pad) + weight_bytes

        need = (2 * TK * (512 + 256) * 2      # layer-1 weight blocks, dbl-buffered, bf16
                + 2 * 2 * TB * TK * 4         # s/ns tiles, dbl-buffered, f32
                + 4 * 256 * 512 * 2           # resident layer-2/3 weights (bf16)
                + TB * (512 + 256) * 4        # accumulator scratch
                + 8 * TB * 512 * 4            # layer-2..4 intermediates headroom
                + (1 << 20))
        try:
            chip_cap = int(pltpu.get_tpu_info().vmem_capacity_bytes)
        except Exception:                      # pragma: no cover - fallback
            chip_cap = 64 << 20
        vmem_limit = max(16 << 20, min(int(1.5 * need), int(0.85 * chip_cap)))

        out = pl.pallas_call(
            _disc_kernel,
            out_shape=jax.ShapeDtypeStruct((1, B_pad), jnp.float32),
            grid_spec=pltpu.PrefetchScalarGridSpec(
                num_scalar_prefetch=0,
                grid=grid,
                in_specs=[smem_spec, act_spec, act_spec, w1cat_spec, vw1_spec]
                         + res_specs,
                out_specs=out_spec,
                scratch_shapes=[pltpu.VMEM((TB, 512), jnp.float32),
                                pltpu.VMEM((TB, 256), jnp.float32)],
            ),
            compiler_params=pltpu.CompilerParams(
                dimension_semantics=("parallel", "arbitrary"),
                vmem_limit_bytes=vmem_limit,
            ),
            cost_estimate=pl.CostEstimate(
                flops=int(total_flops),
                transcendentals=0,
                bytes_accessed=int(bytes_accessed),
            ),
        )(scal, s, ns, self.w1cat_p, self.vw1_p, *resident)

        return out[0, :B].reshape(B, 1)

    # --------------------------------------------------------------- reference
    def forward_ref(self, state, next_state, gamma):
        """Pure-JAX reference (unfused g/h structure, same bf16 weights)."""
        B = state.shape[0]
        s = state.reshape(B, -1).astype(jnp.float32)
        ns = next_state.reshape(B, -1).astype(jnp.float32)

        def mlp(x, w1, b1, w2, b2, w3, b3, wo_row, bo):
            h = _leaky_relu(jnp.dot(x.astype(jnp.bfloat16), w1,
                                    preferred_element_type=jnp.float32) + b1)
            h = _leaky_relu(jnp.dot(h.astype(jnp.bfloat16), w2,
                                    preferred_element_type=jnp.float32) + b2)
            h = _leaky_relu(jnp.dot(h.astype(jnp.bfloat16), w3,
                                    preferred_element_type=jnp.float32) + b3)
            return jnp.sum(h * wo_row, axis=-1, keepdims=True) + bo

        reward = mlp(s, self.rw1, self.rb1, self.rw2, self.rb2,
                     self.rw3, self.rb3, self.rwo, self.rbo)
        v_s = mlp(s, self.vw1, self.vb1, self.vw2, self.vb2,
                  self.vw3, self.vb3, self.vwo, self.vbo)
        v_ns = mlp(ns, self.vw1, self.vb1, self.vw2, self.vb2,
                   self.vw3, self.vb3, self.vwo, self.vbo)
        return reward + gamma * v_ns - v_s


if __name__ == "__main__":
    key = jax.random.PRNGKey(0)
    k_param, k_s, k_ns = jax.random.split(key, 3)

    # Small shapes consistent with the module: batch=2, in_channels=6, HxW=4x8
    B, C, H, W = 2, 6, 4, 8
    state = jax.random.normal(k_s, (B, C, H, W), dtype=jnp.float32)
    next_state = jax.random.normal(k_ns, (B, C, H, W), dtype=jnp.float32)
    gamma = 0.99

    model = DiscriminatorMLPPallas(state_shape=(H, W), in_channels=C,
                                   key=k_param)

    advantage = model.forward(state, next_state, gamma)
    advantage = jax.block_until_ready(advantage)

    ref = model.forward_ref(state, next_state, gamma)
    assert advantage.shape == (B, 1)
    assert jnp.allclose(advantage, ref, atol=2e-3, rtol=2e-3), (
        float(jnp.max(jnp.abs(advantage - ref))))

    print("KERNEL_OK")
</pallas_src>

<mosaic_0001>
module attributes {stable_mosaic.version = 11 : i64} {
  func.func @_disc_kernel(%arg0: i32, %arg1: i32, %arg2: memref<3xf32, #tpu.memory_space<smem>>, %arg3: memref<8x256xf32, #tpu.memory_space<vmem>>, %arg4: memref<8x256xf32, #tpu.memory_space<vmem>>, %arg5: memref<256x512xbf16, #tpu.memory_space<vmem>>, %arg6: memref<256x256xbf16, #tpu.memory_space<vmem>>, %arg7: memref<1x512xf32, #tpu.memory_space<vmem>>, %arg8: memref<1x256xf32, #tpu.memory_space<vmem>>, %arg9: memref<256x512xbf16, #tpu.memory_space<vmem>>, %arg10: memref<1x512xf32, #tpu.memory_space<vmem>>, %arg11: memref<512x256xbf16, #tpu.memory_space<vmem>>, %arg12: memref<1x256xf32, #tpu.memory_space<vmem>>, %arg13: memref<1x256xf32, #tpu.memory_space<vmem>>, %arg14: memref<256x512xbf16, #tpu.memory_space<vmem>>, %arg15: memref<1x512xf32, #tpu.memory_space<vmem>>, %arg16: memref<512x256xbf16, #tpu.memory_space<vmem>>, %arg17: memref<1x256xf32, #tpu.memory_space<vmem>>, %arg18: memref<1x256xf32, #tpu.memory_space<vmem>>, %arg19: memref<1x8xf32, #tpu.memory_space<vmem>>, %arg20: memref<8x512xf32, #tpu.memory_space<vmem>>, %arg21: memref<8x256xf32, #tpu.memory_space<vmem>>) attributes {dimension_semantics = [#tpu.dimension_semantics<parallel>, #tpu.dimension_semantics<arbitrary>], iteration_bounds = array<i64: 1, 1>, scalar_prefetch = 0 : i64, scratch_operands = 2 : i64, tpu.core_type = #tpu.core_type<tc>, window_params = [{transform_indices = @transform_0, window_bounds = array<i64: 3>}, {transform_indices = @transform_1, window_bounds = array<i64: 8, 256>}, {transform_indices = @transform_2, window_bounds = array<i64: 8, 256>}, {transform_indices = @transform_3, window_bounds = array<i64: 256, 512>}, {transform_indices = @transform_4, window_bounds = array<i64: 256, 256>}, {pipeline_mode = #tpu.pipeline_mode<synchronous>, transform_indices = @transform_5, window_bounds = array<i64: 1, 512>}, {pipeline_mode = #tpu.pipeline_mode<synchronous>, transform_indices = @transform_6, window_bounds = array<i64: 1, 256>}, {pipeline_mode = #tpu.pipeline_mode<synchronous>, transform_indices = @transform_7, window_bounds = array<i64: 256, 512>}, {pipeline_mode = #tpu.pipeline_mode<synchronous>, transform_indices = @transform_8, window_bounds = array<i64: 1, 512>}, {pipeline_mode = #tpu.pipeline_mode<synchronous>, transform_indices = @transform_9, window_bounds = array<i64: 512, 256>}, {pipeline_mode = #tpu.pipeline_mode<synchronous>, transform_indices = @transform_10, window_bounds = array<i64: 1, 256>}, {pipeline_mode = #tpu.pipeline_mode<synchronous>, transform_indices = @transform_11, window_bounds = array<i64: 1, 256>}, {pipeline_mode = #tpu.pipeline_mode<synchronous>, transform_indices = @transform_12, window_bounds = array<i64: 256, 512>}, {pipeline_mode = #tpu.pipeline_mode<synchronous>, transform_indices = @transform_13, window_bounds = array<i64: 1, 512>}, {pipeline_mode = #tpu.pipeline_mode<synchronous>, transform_indices = @transform_14, window_bounds = array<i64: 512, 256>}, {pipeline_mode = #tpu.pipeline_mode<synchronous>, transform_indices = @transform_15, window_bounds = array<i64: 1, 256>}, {pipeline_mode = #tpu.pipeline_mode<synchronous>, transform_indices = @transform_16, window_bounds = array<i64: 1, 256>}, {transform_indices = @transform_17, window_bounds = array<i64: 1, 8>}]} {
    %c0_i32 = arith.constant 0 : i32
    %0 = arith.cmpi eq, %arg1, %c0_i32 : i32
    %1 = arith.extui %0 : i1 to i32
    %c0_i32_0 = arith.constant 0 : i32
    %2 = arith.cmpi ne, %1, %c0_i32_0 : i32
    scf.if %2 {
      %cst_19 = arith.constant 0.000000e+00 : f32
      %20 = vector.broadcast %cst_19 : f32 to vector<8x512xf32>
      %c0_20 = arith.constant 0 : index
      %c0_21 = arith.constant 0 : index
      %21 = vector.load %arg20[%c0_20, %c0_21] : memref<8x512xf32, #tpu.memory_space<vmem>>, vector<8x512xf32>
      tpu.vector_store %arg20[%c0_20, %c0_21], %20 {strides = array<i32>} : memref<8x512xf32, #tpu.memory_space<vmem>>, vector<8x512xf32>,
      %cst_22 = arith.constant 0.000000e+00 : f32
      %22 = vector.broadcast %cst_22 : f32 to vector<8x256xf32>
      %c0_23 = arith.constant 0 : index
      %c0_24 = arith.constant 0 : index
      %23 = vector.load %arg21[%c0_23, %c0_24] : memref<8x256xf32, #tpu.memory_space<vmem>>, vector<8x256xf32>
      tpu.vector_store %arg21[%c0_23, %c0_24], %22 {strides = array<i32>} : memref<8x256xf32, #tpu.memory_space<vmem>>, vector<8x256xf32>,
    } else {
    }
    %c0 = arith.constant 0 : index
    %c0_1 = arith.constant 0 : index
    %3 = vector.load %arg3[%c0, %c0_1] : memref<8x256xf32, #tpu.memory_space<vmem>>, vector<8x256xf32>
    %4 = arith.truncf %3 : vector<8x256xf32> to vector<8x256xbf16>
    %c0_2 = arith.constant 0 : index
    %c0_3 = arith.constant 0 : index
    %5 = vector.load %arg4[%c0_2, %c0_3] : memref<8x256xf32, #tpu.memory_space<vmem>>, vector<8x256xf32>
    %6 = arith.truncf %5 : vector<8x256xf32> to vector<8x256xbf16>
    %c0_4 = arith.constant 0 : index
    %c0_5 = arith.constant 0 : index
    %7 = vector.load %arg20[%c0_4, %c0_5] : memref<8x512xf32, #tpu.memory_space<vmem>>, vector<8x512xf32>
    %c0_6 = arith.constant 0 : index
    %c0_7 = arith.constant 0 : index
    %8 = vector.load %arg5[%c0_6, %c0_7] : memref<256x512xbf16, #tpu.memory_space<vmem>>, vector<256x512xbf16>
    %cst = arith.constant dense<0.000000e+00> : vector<8x512xf32>
    %9 = tpu.matmul %4, %8, %cst {dimension_numbers = #tpu.dot_dimension_numbers<[1], [0], [0], [1], [0, 0, 1, 1], [], []>} : vector<8x256xbf16>, vector<256x512xbf16>, vector<8x512xf32> -> vector<8x512xf32>
    %10 = arith.addf %7, %9 : vector<8x512xf32>
    %c0_8 = arith.constant 0 : index
    %c0_9 = arith.constant 0 : index
    %11 = vector.load %arg20[%c0_8, %c0_9] : memref<8x512xf32, #tpu.memory_space<vmem>>, vector<8x512xf32>
    tpu.vector_store %arg20[%c0_8, %c0_9], %10 {strides = array<i32>} : memref<8x512xf32, #tpu.memory_space<vmem>>, vector<8x512xf32>,
    %c0_10 = arith.constant 0 : index
    %c0_11 = arith.constant 0 : index
    %12 = vector.load %arg21[%c0_10, %c0_11] : memref<8x256xf32, #tpu.memory_space<vmem>>, vector<8x256xf32>
    %c0_12 = arith.constant 0 : index
    %c0_13 = arith.constant 0 : index
    %13 = vector.load %arg6[%c0_12, %c0_13] : memref<256x256xbf16, #tpu.memory_space<vmem>>, vector<256x256xbf16>
    %cst_14 = arith.constant dense<0.000000e+00> : vector<8x256xf32>
    %14 = tpu.matmul %6, %13, %cst_14 {dimension_numbers = #tpu.dot_dimension_numbers<[1], [0], [0], [1], [0, 0, 1, 1], [], []>} : vector<8x256xbf16>, vector<256x256xbf16>, vector<8x256xf32> -> vector<8x256xf32>
    %15 = arith.addf %12, %14 : vector<8x256xf32>
    %c0_15 = arith.constant 0 : index
    %c0_16 = arith.constant 0 : index
    %16 = vector.load %arg21[%c0_15, %c0_16] : memref<8x256xf32, #tpu.memory_space<vmem>>, vector<8x256xf32>
    tpu.vector_store %arg21[%c0_15, %c0_16], %15 {strides = array<i32>} : memref<8x256xf32, #tpu.memory_space<vmem>>, vector<8x256xf32>,
    %c0_i32_17 = arith.constant 0 : i32
    %17 = arith.cmpi eq, %arg1, %c0_i32_17 : i32
    %18 = arith.extui %17 : i1 to i32
    %c0_i32_18 = arith.constant 0 : i32
    %19 = arith.cmpi ne, %18, %c0_i32_18 : i32
    scf.if %19 {
      %c0_19 = arith.constant 0 : index
      %20 = memref.load %arg2[%c0_19] : memref<3xf32, #tpu.memory_space<smem>>
      %c0_20 = arith.constant 0 : index
      %c0_21 = arith.constant 0 : index
      %21 = vector.load %arg20[%c0_20, %c0_21] : memref<8x512xf32, #tpu.memory_space<vmem>>, vector<8x512xf32>
      %c0_22 = arith.constant 0 : index
      %c0_23 = arith.constant 0 : index
      %22 = vector.load %arg7[%c0_22, %c0_23] : memref<1x512xf32, #tpu.memory_space<vmem>>, vector<1x512xf32>
      %23 = vector.broadcast %22 : vector<1x512xf32> to vector<8x512xf32>
      %24 = arith.addf %21, %23 : vector<8x512xf32>
      %cst_24 = arith.constant 0.00999999977 : f32
      %25 = vector.broadcast %cst_24 : f32 to vector<8x512xf32>
      %26 = arith.mulf %25, %24 : vector<8x512xf32>
      %27 = arith.maximumf %24, %26 : vector<8x512xf32>
      %28 = vector.extract_strided_slice %27 {offsets = [0, 0], sizes = [8, 256], strides = [1, 1]} : vector<8x512xf32> to vector<8x256xf32>
      %29 = vector.extract_strided_slice %27 {offsets = [0, 256], sizes = [8, 256], strides = [1, 1]} : vector<8x512xf32> to vector<8x256xf32>
      %c0_25 = arith.constant 0 : index
      %c0_26 = arith.constant 0 : index
      %30 = vector.load %arg21[%c0_25, %c0_26] : memref<8x256xf32, #tpu.memory_space<vmem>>, vector<8x256xf32>
      %c0_27 = arith.constant 0 : index
      %c0_28 = arith.constant 0 : index
      %31 = vector.load %arg8[%c0_27, %c0_28] : memref<1x256xf32, #tpu.memory_space<vmem>>, vector<1x256xf32>
      %32 = vector.broadcast %31 : vector<1x256xf32> to vector<8x256xf32>
      %33 = arith.addf %30, %32 : vector<8x256xf32>
      %cst_29 = arith.constant 0.00999999977 : f32
      %34 = vector.broadcast %cst_29 : f32 to vector<8x256xf32>
      %35 = arith.mulf %34, %33 : vector<8x256xf32>
      %36 = arith.maximumf %33, %35 : vector<8x256xf32>
      %37 = arith.truncf %28 : vector<8x256xf32> to vector<8x256xbf16>
      %c0_30 = arith.constant 0 : index
      %c0_31 = arith.constant 0 : index
      %38 = vector.load %arg9[%c0_30, %c0_31] : memref<256x512xbf16, #tpu.memory_space<vmem>>, vector<256x512xbf16>
      %cst_32 = arith.constant dense<0.000000e+00> : vector<8x512xf32>
      %39 = tpu.matmul %37, %38, %cst_32 {dimension_numbers = #tpu.dot_dimension_numbers<[1], [0], [0], [1], [0, 0, 1, 1], [], []>} : vector<8x256xbf16>, vector<256x512xbf16>, vector<8x512xf32> -> vector<8x512xf32>
      %c0_33 = arith.constant 0 : index
      %c0_34 = arith.constant 0 : index
      %40 = vector.load %arg10[%c0_33, %c0_34] : memref<1x512xf32, #tpu.memory_space<vmem>>, vector<1x512xf32>
      %41 = vector.broadcast %40 : vector<1x512xf32> to vector<8x512xf32>
      %42 = arith.addf %39, %41 : vector<8x512xf32>
      %cst_35 = arith.constant 0.00999999977 : f32
      %43 = vector.broadcast %cst_35 : f32 to vector<8x512xf32>
      %44 = arith.mulf %43, %42 : vector<8x512xf32>
      %45 = arith.maximumf %42, %44 : vector<8x512xf32>
      %46 = arith.truncf %45 : vector<8x512xf32> to vector<8x512xbf16>
      %c0_36 = arith.constant 0 : index
      %c0_37 = arith.constant 0 : index
      %47 = vector.load %arg11[%c0_36, %c0_37] : memref<512x256xbf16, #tpu.memory_space<vmem>>, vector<512x256xbf16>
      %cst_38 = arith.constant dense<0.000000e+00> : vector<8x256xf32>
      %48 = tpu.matmul %46, %47, %cst_38 {dimension_numbers = #tpu.dot_dimension_numbers<[1], [0], [0], [1], [0, 0, 1, 1], [], []>} : vector<8x512xbf16>, vector<512x256xbf16>, vector<8x256xf32> -> vector<8x256xf32>
      %c0_39 = arith.constant 0 : index
      %c0_40 = arith.constant 0 : index
      %49 = vector.load %arg12[%c0_39, %c0_40] : memref<1x256xf32, #tpu.memory_space<vmem>>, vector<1x256xf32>
      %50 = vector.broadcast %49 : vector<1x256xf32> to vector<8x256xf32>
      %51 = arith.addf %48, %50 : vector<8x256xf32>
      %cst_41 = arith.constant 0.00999999977 : f32
      %52 = vector.broadcast %cst_41 : f32 to vector<8x256xf32>
      %53 = arith.mulf %52, %51 : vector<8x256xf32>
      %54 = arith.maximumf %51, %53 : vector<8x256xf32>
      %c0_42 = arith.constant 0 : index
      %c0_43 = arith.constant 0 : index
      %55 = vector.load %arg13[%c0_42, %c0_43] : memref<1x256xf32, #tpu.memory_space<vmem>>, vector<1x256xf32>
      %56 = vector.broadcast %55 : vector<1x256xf32> to vector<8x256xf32>
      %57 = arith.mulf %54, %56 : vector<8x256xf32>
      %cst_44 = arith.constant dense<0.000000e+00> : vector<8xf32>
      %58 = vector.multi_reduction <add>, %57, %cst_44 [1] : vector<8x256xf32> to vector<8xf32>
      %c1 = arith.constant 1 : index
      %59 = memref.load %arg2[%c1] : memref<3xf32, #tpu.memory_space<smem>>
      %60 = vector.broadcast %59 : f32 to vector<8xf32>
      %61 = arith.addf %58, %60 : vector<8xf32>
      %62 = tpu.concatenate %29, %36 in 0 : vector<8x256xf32>, vector<8x256xf32> -> vector<16x256xf32>
      %63 = arith.truncf %62 : vector<16x256xf32> to vector<16x256xbf16>
      %c0_45 = arith.constant 0 : index
      %c0_46 = arith.constant 0 : index
      %64 = vector.load %arg14[%c0_45, %c0_46] : memref<256x512xbf16, #tpu.memory_space<vmem>>, vector<256x512xbf16>
      %cst_47 = arith.constant dense<0.000000e+00> : vector<16x512xf32>
      %65 = tpu.matmul %63, %64, %cst_47 {dimension_numbers = #tpu.dot_dimension_numbers<[1], [0], [0], [1], [0, 0, 1, 1], [], []>} : vector<16x256xbf16>, vector<256x512xbf16>, vector<16x512xf32> -> vector<16x512xf32>
      %c0_48 = arith.constant 0 : index
      %c0_49 = arith.constant 0 : index
      %66 = vector.load %arg15[%c0_48, %c0_49] : memref<1x512xf32, #tpu.memory_space<vmem>>, vector<1x512xf32>
      %67 = vector.broadcast %66 : vector<1x512xf32> to vector<16x512xf32>
      %68 = arith.addf %65, %67 : vector<16x512xf32>
      %cst_50 = arith.constant 0.00999999977 : f32
      %69 = vector.broadcast %cst_50 : f32 to vector<16x512xf32>
      %70 = arith.mulf %69, %68 : vector<16x512xf32>
      %71 = arith.maximumf %68, %70 : vector<16x512xf32>
      %72 = arith.truncf %71 : vector<16x512xf32> to vector<16x512xbf16>
      %c0_51 = arith.constant 0 : index
      %c0_52 = arith.constant 0 : index
      %73 = vector.load %arg16[%c0_51, %c0_52] : memref<512x256xbf16, #tpu.memory_space<vmem>>, vector<512x256xbf16>
      %cst_53 = arith.constant dense<0.000000e+00> : vector<16x256xf32>
      %74 = tpu.matmul %72, %73, %cst_53 {dimension_numbers = #tpu.dot_dimension_numbers<[1], [0], [0], [1], [0, 0, 1, 1], [], []>} : vector<16x512xbf16>, vector<512x256xbf16>, vector<16x256xf32> -> vector<16x256xf32>
      %c0_54 = arith.constant 0 : index
      %c0_55 = arith.constant 0 : index
      %75 = vector.load %arg17[%c0_54, %c0_55] : memref<1x256xf32, #tpu.memory_space<vmem>>, vector<1x256xf32>
      %76 = vector.broadcast %75 : vector<1x256xf32> to vector<16x256xf32>
      %77 = arith.addf %74, %76 : vector<16x256xf32>
      %cst_56 = arith.constant 0.00999999977 : f32
      %78 = vector.broadcast %cst_56 : f32 to vector<16x256xf32>
      %79 = arith.mulf %78, %77 : vector<16x256xf32>
      %80 = arith.maximumf %77, %79 : vector<16x256xf32>
      %81 = vector.extract_strided_slice %80 {offsets = [0, 0], sizes = [8, 256], strides = [1, 1]} : vector<16x256xf32> to vector<8x256xf32>
      %c0_57 = arith.constant 0 : index
      %c0_58 = arith.constant 0 : index
      %82 = vector.load %arg18[%c0_57, %c0_58] : memref<1x256xf32, #tpu.memory_space<vmem>>, vector<1x256xf32>
      %83 = vector.broadcast %82 : vector<1x256xf32> to vector<8x256xf32>
      %84 = arith.mulf %81, %83 : vector<8x256xf32>
      %cst_59 = arith.constant dense<0.000000e+00> : vector<8xf32>
      %85 = vector.multi_reduction <add>, %84, %cst_59 [1] : vector<8x256xf32> to vector<8xf32>
      %c2 = arith.constant 2 : index
      %86 = memref.load %arg2[%c2] : memref<3xf32, #tpu.memory_space<smem>>
      %87 = vector.broadcast %86 : f32 to vector<8xf32>
      %88 = arith.addf %85, %87 : vector<8xf32>
      %89 = vector.extract_strided_slice %80 {offsets = [8, 0], sizes = [8, 256], strides = [1, 1]} : vector<16x256xf32> to vector<8x256xf32>
      %c0_60 = arith.constant 0 : index
      %c0_61 = arith.constant 0 : index
      %90 = vector.load %arg18[%c0_60, %c0_61] : memref<1x256xf32, #tpu.memory_space<vmem>>, vector<1x256xf32>
      %91 = vector.broadcast %90 : vector<1x256xf32> to vector<8x256xf32>
      %92 = arith.mulf %89, %91 : vector<8x256xf32>
      %cst_62 = arith.constant dense<0.000000e+00> : vector<8xf32>
      %93 = vector.multi_reduction <add>, %92, %cst_62 [1] : vector<8x256xf32> to vector<8xf32>
      %c2_63 = arith.constant 2 : index
      %94 = memref.load %arg2[%c2_63] : memref<3xf32, #tpu.memory_space<smem>>
      %95 = vector.broadcast %94 : f32 to vector<8xf32>
      %96 = arith.addf %93, %95 : vector<8xf32>
      %97 = vector.broadcast %20 : f32 to vector<8xf32>
      %98 = arith.mulf %97, %96 : vector<8xf32>
      %99 = arith.addf %61, %98 : vector<8xf32>
      %100 = arith.subf %99, %88 : vector<8xf32>
      %101 = vector.shape_cast %100 : vector<8xf32> to vector<1x8xf32>
      %c0_64 = arith.constant 0 : index
      %c0_65 = arith.constant 0 : index
      %102 = vector.load %arg19[%c0_64, %c0_65] : memref<1x8xf32, #tpu.memory_space<vmem>>, vector<1x8xf32>
      tpu.vector_store %arg19[%c0_64, %c0_65], %101 {strides = array<i32>} : memref<1x8xf32, #tpu.memory_space<vmem>>, vector<1x8xf32>,
    } else {
    }
    return
  }
  func.func @transform_0(%arg0: i32, %arg1: i32) -> i32 {
    %c0_i32 = arith.constant 0 : i32
    %c0_i32_0 = arith.constant 0 : i32
    return %c0_i32 : i32
  }
  func.func @transform_1(%arg0: i32, %arg1: i32) -> (i32, i32) {
    %c0_i32 = arith.constant 0 : i32
    return %arg0, %arg1 : i32, i32
  }
  func.func @transform_2(%arg0: i32, %arg1: i32) -> (i32, i32) {
    %c0_i32 = arith.constant 0 : i32
    return %arg0, %arg1 : i32, i32
  }
  func.func @transform_3(%arg0: i32, %arg1: i32) -> (i32, i32) {
    %c0_i32 = arith.constant 0 : i32
    %c0_i32_0 = arith.constant 0 : i32
    return %arg1, %c0_i32 : i32, i32
  }
  func.func @transform_4(%arg0: i32, %arg1: i32) -> (i32, i32) {
    %c0_i32 = arith.constant 0 : i32
    %c0_i32_0 = arith.constant 0 : i32
    return %arg1, %c0_i32 : i32, i32
  }
  func.func @transform_5(%arg0: i32, %arg1: i32) -> (i32, i32) {
    %c0_i32 = arith.constant 0 : i32
    %c0_i32_0 = arith.constant 0 : i32
    %c0_i32_1 = arith.constant 0 : i32
    return %c0_i32, %c0_i32_0 : i32, i32
  }
  func.func @transform_6(%arg0: i32, %arg1: i32) -> (i32, i32) {
    %c0_i32 = arith.constant 0 : i32
    %c0_i32_0 = arith.constant 0 : i32
    %c0_i32_1 = arith.constant 0 : i32
    return %c0_i32, %c0_i32_0 : i32, i32
  }
  func.func @transform_7(%arg0: i32, %arg1: i32) -> (i32, i32) {
    %c0_i32 = arith.constant 0 : i32
    %c0_i32_0 = arith.constant 0 : i32
    %c0_i32_1 = arith.constant 0 : i32
    return %c0_i32, %c0_i32_0 : i32, i32
  }
  func.func @transform_8(%arg0: i32, %arg1: i32) -> (i32, i32) {
    %c0_i32 = arith.constant 0 : i32
    %c0_i32_0 = arith.constant 0 : i32
    %c0_i32_1 = arith.constant 0 : i32
    return %c0_i32, %c0_i32_0 : i32, i32
  }
  func.func @transform_9(%arg0: i32, %arg1: i32) -> (i32, i32) {
    %c0_i32 = arith.constant 0 : i32
    %c0_i32_0 = arith.constant 0 : i32
    %c0_i32_1 = arith.constant 0 : i32
    return %c0_i32, %c0_i32_0 : i32, i32
  }
  func.func @transform_10(%arg0: i32, %arg1: i32) -> (i32, i32) {
    %c0_i32 = arith.constant 0 : i32
    %c0_i32_0 = arith.constant 0 : i32
    %c0_i32_1 = arith.constant 0 : i32
    return %c0_i32, %c0_i32_0 : i32, i32
  }
  func.func @transform_11(%arg0: i32, %arg1: i32) -> (i32, i32) {
    %c0_i32 = arith.constant 0 : i32
    %c0_i32_0 = arith.constant 0 : i32
    %c0_i32_1 = arith.constant 0 : i32
    return %c0_i32, %c0_i32_0 : i32, i32
  }
  func.func @transform_12(%arg0: i32, %arg1: i32) -> (i32, i32) {
    %c0_i32 = arith.constant 0 : i32
    %c0_i32_0 = arith.constant 0 : i32
    %c0_i32_1 = arith.constant 0 : i32
    return %c0_i32, %c0_i32_0 : i32, i32
  }
  func.func @transform_13(%arg0: i32, %arg1: i32) -> (i32, i32) {
    %c0_i32 = arith.constant 0 : i32
    %c0_i32_0 = arith.constant 0 : i32
    %c0_i32_1 = arith.constant 0 : i32
    return %c0_i32, %c0_i32_0 : i32, i32
  }
  func.func @transform_14(%arg0: i32, %arg1: i32) -> (i32, i32) {
    %c0_i32 = arith.constant 0 : i32
    %c0_i32_0 = arith.constant 0 : i32
    %c0_i32_1 = arith.constant 0 : i32
    return %c0_i32, %c0_i32_0 : i32, i32
  }
  func.func @transform_15(%arg0: i32, %arg1: i32) -> (i32, i32) {
    %c0_i32 = arith.constant 0 : i32
    %c0_i32_0 = arith.constant 0 : i32
    %c0_i32_1 = arith.constant 0 : i32
    return %c0_i32, %c0_i32_0 : i32, i32
  }
  func.func @transform_16(%arg0: i32, %arg1: i32) -> (i32, i32) {
    %c0_i32 = arith.constant 0 : i32
    %c0_i32_0 = arith.constant 0 : i32
    %c0_i32_1 = arith.constant 0 : i32
    return %c0_i32, %c0_i32_0 : i32, i32
  }
  func.func @transform_17(%arg0: i32, %arg1: i32) -> (i32, i32) {
    %c0_i32 = arith.constant 0 : i32
    %c0_i32_0 = arith.constant 0 : i32
    return %c0_i32, %arg0 : i32, i32
  }
}

</mosaic_0001>

<bundles_post_ra>
// kernel: tpu_custom_call.1
= control target key start
LH: loop header
LB: loop body
LE: loop exit
PB: predicated region body
PF: predicated region fallthrough
CT: control target
= control target key end

     0   :  { %s4399_s0 = inlined_call_operand.hbm [shape: f32[3], index: 0, kind: input, shape index: {}]   ;;  %s4400_s1 = inlined_call_operand.hbm [shape: f32[8,256], index: 1, kind: input, shape index: {}]   ;;  %s4401_s2 = inlined_call_operand.hbm [shape: f32[8,256], index: 2, kind: input, shape index: {}]   ;;  %s4402_s3 = inlined_call_operand.hbm [shape: bf16[256,512], index: 3, kind: input, shape index: {}]   ;;  %s4403_s4 = inlined_call_operand.hbm [shape: bf16[256,256], index: 4, kind: input, shape index: {}]   ;;  %s4404_s5 = inlined_call_operand.vmem [shape: f32[1,512], index: 5, kind: input, shape index: {}]   ;;  %s4405_s6 = inlined_call_operand.hbm [shape: f32[1,256], index: 6, kind: input, shape index: {}]   ;;  %s4406_s7 = inlined_call_operand.hbm [shape: bf16[256,512], index: 7, kind: input, shape index: {}]   ;;  %s4407_s8 = inlined_call_operand.vmem [shape: f32[1,512], index: 8, kind: input, shape index: {}]   ;;  %s4408_s9 = inlined_call_operand.hbm [shape: bf16[512,256], index: 9, kind: input, shape index: {}]   ;;  %s4409_s10 = inlined_call_operand.vmem [shape: f32[1,256], index: 10, kind: input, shape index: {}]   ;;  %s4410_s11 = inlined_call_operand.vmem [shape: f32[1,256], index: 11, kind: input, shape index: {}]   ;;  %s4411_s12 = inlined_call_operand.hbm [shape: bf16[256,512], index: 12, kind: input, shape index: {}]   ;;  %s4412_s13 = inlined_call_operand.vmem [shape: f32[1,512], index: 13, kind: input, shape index: {}]   ;;  %s4413_s14 = inlined_call_operand.hbm [shape: bf16[512,256], index: 14, kind: input, shape index: {}]   ;;  %s4414_s15 = inlined_call_operand.vmem [shape: f32[1,256], index: 15, kind: input, shape index: {}]   ;;  %s4415_s16 = inlined_call_operand.vmem [shape: f32[1,256], index: 16, kind: input, shape index: {}]   ;;  %s4416_s17 = inlined_call_operand.hbm [shape: f32[1,8], index: 17, kind: output, shape index: {}]  }
   0x1   :  { %4417 = sst [smem:[#allocation29_spill]] %s4399_s0 }
   0x2   :  { %4418 = sst [smem:[#allocation30_spill]] %s4400_s1 }
   0x3   :  { %22 = vsyncpa [#allocation7], 0 }
   0x4   :  { %23 = vsyncpa [#allocation5], 0 }
   0x5   :  { %24 = vsyncpa [#allocation10], 0 }
   0x6   :  { %25 = vsyncpa [#allocation13], 0 }
   0x7   :  { %26 = vsyncpa [#allocation16], 0 }
   0x8   :  { %27 = vsyncpa [#allocation19], 0 }
   0x9   :  { %28 = vsyncpa [#allocation6], 0  ;;  %s4168_s24 = smov [#allocation9]   ;;  %s4169_s26 = smov [#allocation12]  }
   0xa   :  { %s53_s25 = sshll.u32 %s4168_s24, 4  ;;  %s74_s27 = sshll.u32 %s4169_s26, 4  ;;  %s54_s25 = int_to_ptr.vmem [resolvable:$true] %s53_s25  ;;  %s75_s27 = int_to_ptr.vmem [resolvable:$true] %s74_s27 }
   0xb   :  { %s3954_s28 = scalar_lea.vmem %s54_s25, 256  ;;  %p3959_p1 = scmp.lt.s32.totalorder %s54_s25, %s54_s25 }
   0xc   :  { %p3955_p0 = scmp.ne.s32.totalorder %s54_s25, %s3954_s28  ;;  %p3960_p2 = scmp.lt.s32.totalorder %s3954_s28, %s3954_s28 }
   0xe   :  { %p3961_p3 = por %p3960_p2, %p3959_p1 }
  0x10   :  { %p3962_p4 = pnand %p3961_p3, %p3955_p0 }
  0x12   :  { %3965 = shalt.err (!%p3962_p4)
}
  0x13   :  { %56 = dma.hbm_to_vmem [thread:$0]  %s4401_s2, 256, %s54_s25, [#allocation10]  }
  0x14   :  { %s3974_s30 = scalar_lea.vmem %s75_s27, 4096  ;;  %p3979_p6 = scmp.lt.s32.totalorder %s75_s27, %s75_s27 }
  0x15   :  { %p3975_p5 = scmp.ne.s32.totalorder %s75_s27, %s3974_s30  ;;  %p3980_p7 = scmp.lt.s32.totalorder %s3974_s30, %s3974_s30 }
  0x17   :  { %p3981_p8 = por %p3980_p7, %p3979_p6 }
  0x19   :  { %p3982_p9 = pnand %p3981_p8, %p3975_p5 }
  0x1b   :  { %3985 = shalt.err (!%p3982_p9)
}
  0x1c   :  { %s4170_s18 = smov 128   ;;  %s4171_s19 = smov 8  }
  0x1d   :  { %80 = dma.hbm_to_vmem [thread:$0]  %s4403_s4, 4096, %s75_s27, [#allocation13], %s4170_s18, %s4170_s18, %s4171_s19  }
  0x1e   :  { %s4172_s21 = smov [#allocation15]   ;;  %s4173_s23 = smov [#allocation18]  }
  0x1f   :  { %s98_s22 = sshll.u32 %s4172_s21, 4  ;;  %s128_s2 = sshll.u32 %s4173_s23, 4  ;;  %s99_s22 = int_to_ptr.vmem [resolvable:$true] %s98_s22  ;;  %s129_s2 = int_to_ptr.vmem [resolvable:$true] %s128_s2 }
  0x20   :  { %s3994_s24 = scalar_lea.vmem %s99_s22, 8192  ;;  %p3999_p11 = scmp.lt.s32.totalorder %s99_s22, %s99_s22 }
  0x21   :  { %p3995_p10 = scmp.ne.s32.totalorder %s99_s22, %s3994_s24  ;;  %p4000_p12 = scmp.lt.s32.totalorder %s3994_s24, %s3994_s24 }
  0x23   :  { %p4001_p13 = por %p4000_p12, %p3999_p11 }
  0x25   :  { %p4002_p0 = pnand %p4001_p13, %p3995_p10 }
  0x27   :  { %4005 = shalt.err (!%p4002_p0)
}
  0x28   :  { %s4174_s25 = smov 256   ;;  %s4175_s26 = smov 16  }
  0x29   :  { %104 = dma.hbm_to_vmem [thread:$0]  %s4406_s7, 8192, %s99_s22, [#allocation16], %s4174_s25, %s4174_s25, %s4175_s26  }
  0x2a   :  { %s4014_s27 = scalar_lea.vmem %s129_s2, 8192  ;;  %p4019_p2 = scmp.lt.s32.totalorder %s129_s2, %s129_s2 }
  0x2b   :  { %p4015_p1 = scmp.ne.s32.totalorder %s129_s2, %s4014_s27  ;;  %p4020_p3 = scmp.lt.s32.totalorder %s4014_s27, %s4014_s27 }
  0x2d   :  { %p4021_p4 = por %p4020_p3, %p4019_p2 }
  0x2f   :  { %p4022_p5 = pnand %p4021_p4, %p4015_p1 }
  0x31   :  { %4025 = shalt.err (!%p4022_p5)
}
  0x32   :  { %134 = dma.hbm_to_vmem [thread:$0]  %s4411_s12, 8192, %s129_s2, [#allocation19], %s4174_s25, %s4174_s25, %s4175_s26  }
  0x33   :  { %s4176_s30 = smov [#allocation4]   ;;  %s4419_s21 = sld [smem:[#allocation29_spill]] }
  0x34   :  { %s4177_s7 = smov [#allocation8]   ;;  %s4178_s23 = smov [#allocation11]  }
  0x35   :  { %s43_s22 = sshll.u32 %s4177_s7, 4  ;;  %s62_s24 = sshll.u32 %s4178_s23, 4  ;;  %s44_s22 = int_to_ptr.vmem [resolvable:$true] %s43_s22  ;;  %s63_s24 = int_to_ptr.vmem [resolvable:$true] %s62_s24 }
  0x36   :  { %s4042_s28 = scalar_lea.vmem %s44_s22, 256  ;;  %p4047_p7 = scmp.lt.s32.totalorder %s44_s22, %s44_s22 }
  0x37   :  { %p4043_p6 = scmp.ne.s32.totalorder %s44_s22, %s4042_s28  ;;  %p4048_p8 = scmp.lt.s32.totalorder %s4042_s28, %s4042_s28 }
  0x39   :  { %36 = dma.hbm_to_smem %s4419_s21, 16, %s4176_s30, [#allocation7]  }
  0x3a   :  { %p4049_p9 = por %p4048_p8, %p4047_p7 }
  0x3c   :  { %p4050_p10 = pnand %p4049_p9, %p4043_p6 }
  0x3e   :  { %4053 = shalt.err (!%p4050_p10)
}
  0x3f   :  { %s4420_s12 = sld [smem:[#allocation30_spill]]  ;;  %s4062_s2 = scalar_lea.vmem %s63_s24, 8192 }
  0x40   :  { %p4063_p11 = scmp.ne.s32.totalorder %s63_s24, %s4062_s2  ;;  %p4067_p12 = scmp.lt.s32.totalorder %s63_s24, %s63_s24 }
  0x41   :  { %p4068_p13 = scmp.lt.s32.totalorder %s4062_s2, %s4062_s2 }
  0x43   :  { %p4069_p0 = por %p4068_p13, %p4067_p12 }
  0x45   :  { %46 = dma.hbm_to_vmem [thread:$0]  %s4420_s12, 256, %s44_s22, [#allocation5]  }
  0x46   :  { %p4070_p1 = pnand %p4069_p0, %p4063_p11 }
  0x48   :  { %4073 = shalt.err (!%p4070_p1)
}
  0x49   :  { %68 = dma.hbm_to_vmem [thread:$0]  %s4402_s3, 8192, %s63_s24, [#allocation10], %s4174_s25, %s4174_s25, %s4175_s26  }
  0x4a   :  { %s4179_s30 = smov [#allocation14]   ;;  %s4180_s20 = smov [#allocation17]  }
  0x4b   :  { %s89_s1 = sshll.u32 %s4179_s30, 4  ;;  %s112_s21 = sshll.u32 %s4180_s20, 4  ;;  %s90_s1 = int_to_ptr.vmem [resolvable:$true] %s89_s1  ;;  %s113_s21 = int_to_ptr.vmem [resolvable:$true] %s112_s21 }
  0x4c   :  { %s4082_s7 = scalar_lea.vmem %s90_s1, 32  ;;  %p4087_p3 = scmp.lt.s32.totalorder %s90_s1, %s90_s1 }
  0x4d   :  { %p4083_p2 = scmp.ne.s32.totalorder %s90_s1, %s4082_s7  ;;  %p4088_p4 = scmp.lt.s32.totalorder %s4082_s7, %s4082_s7 }
  0x4f   :  { %p4089_p5 = por %p4088_p4, %p4087_p3 }
  0x51   :  { %p4090_p6 = pnand %p4089_p5, %p4083_p2 }
  0x53   :  { %4093 = shalt.err (!%p4090_p6)
}
  0x54   :  { %92 = dma.hbm_to_vmem [thread:$0]  %s4405_s6, 32, %s90_s1, [#allocation13]  }
  0x55   :  { %s4102_s28 = scalar_lea.vmem %s113_s21, 8192  ;;  %p4107_p8 = scmp.lt.s32.totalorder %s113_s21, %s113_s21 }
  0x56   :  { %p4103_p7 = scmp.ne.s32.totalorder %s113_s21, %s4102_s28  ;;  %p4108_p9 = scmp.lt.s32.totalorder %s4102_s28, %s4102_s28 }
  0x58   :  { %p4109_p10 = por %p4108_p9, %p4107_p8 }
  0x5a   :  { %p4110_p11 = pnand %p4109_p10, %p4103_p7 }
  0x5c   :  { %4113 = shalt.err (!%p4110_p11)
}
  0x5d   :  { %118 = dma.hbm_to_vmem [thread:$0]  %s4408_s9, 8192, %s113_s21, [#allocation16], %s4170_s18, %s4170_s18, %s4171_s19  }
  0x5e   :  { %s4181_s26 = smov [#allocation20]  }
  0x5f   :  { %s142_s24 = sshll.u32 %s4181_s26, 4  ;;  %s143_s24 = int_to_ptr.vmem [resolvable:$true] %s142_s24 }
  0x60   :  { %s4122_s4 = scalar_lea.vmem %s143_s24, 8192  ;;  %p4127_p13 = scmp.lt.s32.totalorder %s143_s24, %s143_s24 }
  0x61   :  { %p4123_p12 = scmp.ne.s32.totalorder %s143_s24, %s4122_s4  ;;  %p4128_p0 = scmp.lt.s32.totalorder %s4122_s4, %s4122_s4 }
  0x63   :  { %p4129_p1 = por %p4128_p0, %p4127_p13 }
  0x65   :  { %p4130_p2 = pnand %p4129_p1, %p4123_p12 }
  0x67   :  { %4133 = shalt.err (!%p4130_p2)
}
  0x68   :  { %148 = dma.hbm_to_vmem [thread:$0]  %s4413_s14, 8192, %s143_s24, [#allocation19], %s4170_s18, %s4170_s18, %s4171_s19  }
  0x69   :  { %4154 = dma.done.wait [#allocation7], 16  }
  0x6a   :  { %4155 = vsyncadd [#allocation7], 4294967280 }
  0x6b   :  { %4156 = dma.done.wait [#allocation5], 256  }
  0x6c   :  { %4157 = vsyncadd [#allocation5], 4294967040 }
  0x6d   :  { %4158 = dma.done.wait [#allocation10], 8448  }
  0x6e   :  { %4159 = vsyncadd [#allocation10], 4294958848 }
  0x6f   :  { %4160 = dma.done.wait [#allocation13], 4128  }
  0x70   :  { %4161 = vsyncadd [#allocation13], 4294963168 }
  0x71   :  { %4162 = dma.done.wait [#allocation16], 16384  }
  0x72   :  { %4163 = vsyncadd [#allocation16], 4294950912 }
  0x73   :  { %4164 = dma.done.wait [#allocation19], 16384  }
  0x74   :  { %4165 = vsyncadd [#allocation19], 4294950912 }
  0x75   :  { %183 = sfence }
  0x76   :  { %v3418_v0 = vld [vmem:[#allocation11 + $0xe4] ss:$16 sps:$4 sm:$0xff]   ;;  %v3420_v1 = vld [vmem:[#allocation11 + $0xe0] ss:$16 sps:$4 sm:$0xff]   ;;  %v195_v14 = vld [vmem:[#allocation8 + $0x8] sm:$0xff]  ;;  %s3273_s1 = sld [smem:[#allocation4 + $0x1]] }
  0x77   :  { %590 = vmatprep.subr.bf16.mxu0 %v3418_v0  ;;  %v3421_v2 = vld [vmem:[#allocation11 + $0xc4] ss:$16 sps:$4 sm:$0xff]   ;;  %v3423_v3 = vld [vmem:[#allocation11 + $0xc0] ss:$16 sps:$4 sm:$0xff]   ;;  %v197_v15 = vpack.c.bf16 %v195_v14, %v195_v14  ;;  %v3466_v16 = vld [vmem:[#allocation11 + $0xec] ss:$16 sps:$4 sm:$0xff]  }
  0x78   :  { %591 = vmatpush1.bf16.msra.mxu0 %v3420_v1  ;;  %v3424_v4 = vld [vmem:[#allocation11 + $0xa4] ss:$16 sps:$4 sm:$0xff]   ;;  %v3426_v5 = vld [vmem:[#allocation11 + $0xa0] ss:$16 sps:$4 sm:$0xff]   ;;  %v3468_v17 = vld [vmem:[#allocation11 + $0xe8] ss:$16 sps:$4 sm:$0xff]   ;;  %631 = vmatprep.subr.bf16.mxu1 %v3466_v16 }
  0x79   :  { %592 = vmatprep.subr.bf16.mxu0 %v3421_v2  ;;  %v3427_v6 = vld [vmem:[#allocation11 + $0x84] ss:$16 sps:$4 sm:$0xff]   ;;  %v3429_v7 = vld [vmem:[#allocation11 + $0x80] ss:$16 sps:$4 sm:$0xff]   ;;  %622 = vmatprep.mubr.bf16.mxu0 %v197_v15  ;;  %v3472_v19 = vld [vmem:[#allocation11 + $0xcc] ss:$16 sps:$4 sm:$0xff]  }
  0x7a   :  { %v3430_v8 = vld [vmem:[#allocation11 + $0x64] ss:$16 sps:$4 sm:$0xff]   ;;  %v3432_v9 = vld [vmem:[#allocation11 + $0x60] ss:$16 sps:$4 sm:$0xff]   ;;  %663 = vmatprep.mubr.bf16.mxu1 %v197_v15  ;;  %632 = vmatpush1.bf16.msra.mxu1 %v3468_v17  ;;  %v3474_v20 = vld [vmem:[#allocation11 + $0xc8] ss:$16 sps:$4 sm:$0xff]  }
  0x7b   :  { %v3433_v10 = vld [vmem:[#allocation11 + $0x44] ss:$16 sps:$4 sm:$0xff]   ;;  %v3435_v11 = vld [vmem:[#allocation11 + $0x40] ss:$16 sps:$4 sm:$0xff]   ;;  %633 = vmatprep.subr.bf16.mxu1 %v3472_v19  ;;  %v3478_v23 = vld [vmem:[#allocation11 + $0xac] ss:$16 sps:$4 sm:$0xff]  }
  0x7c   :  { %593 = vmatpush1.bf16.msra.mxu0 %v3423_v3  ;;  %v3436_v12 = vld [vmem:[#allocation11 + $0x24] ss:$16 sps:$4 sm:$0xff]   ;;  %v3438_v13 = vld [vmem:[#allocation11 + $0x20] ss:$16 sps:$4 sm:$0xff]   ;;  %v3480_v25 = vld [vmem:[#allocation11 + $0xa8] ss:$16 sps:$4 sm:$0xff]  }
  0x7d   :  { %594 = vmatprep.subr.bf16.mxu0 %v3424_v4  ;;  %v3439_v18 = vld [vmem:[#allocation11 + $0x4] ss:$16 sps:$4 sm:$0xff]   ;;  %v3441_v21 = vld [vmem:[#allocation11] ss:$16 sps:$4 sm:$0xff]   ;;  %v3484_v26 = vld [vmem:[#allocation11 + $0x8c] ss:$16 sps:$4 sm:$0xff]  }
  0x7e   :  { %v3442_v22 = vld [vmem:[#allocation11 + $0x1e4] ss:$16 sps:$4 sm:$0xff]   ;;  %v3444_v24 = vld [vmem:[#allocation11 + $0x1e0] ss:$16 sps:$4 sm:$0xff]   ;;  %634 = vmatpush1.bf16.msra.mxu1 %v3474_v20  ;;  %v3486_v29 = vld [vmem:[#allocation11 + $0x88] ss:$16 sps:$4 sm:$0xff]  }
  0x7f   :  { %635 = vmatprep.subr.bf16.mxu1 %v3478_v23  ;;  %v3445_v27 = vld [vmem:[#allocation11 + $0x1c4] ss:$16 sps:$4 sm:$0xff]   ;;  %v3447_v28 = vld [vmem:[#allocation11 + $0x1c0] ss:$16 sps:$4 sm:$0xff]   ;;  %v3490_v30 = vld [vmem:[#allocation11 + $0x6c] ss:$16 sps:$4 sm:$0xff]  }
  0x80   :  { %595 = vmatpush1.bf16.msra.mxu0 %v3426_v5  ;;  %v3448_v31 = vld [vmem:[#allocation11 + $0x1a4] ss:$16 sps:$4 sm:$0xff]   ;;  %v3450_v32 = vld [vmem:[#allocation11 + $0x1a0] ss:$16 sps:$4 sm:$0xff]   ;;  %v3492_v33 = vld [vmem:[#allocation11 + $0x68] ss:$16 sps:$4 sm:$0xff]  }
  0x81   :  { %596 = vmatprep.subr.bf16.mxu0 %v3427_v6  ;;  %v3496_v34 = vld [vmem:[#allocation11 + $0x4c] ss:$16 sps:$4 sm:$0xff]   ;;  %v3451_v35 = vld [vmem:[#allocation11 + $0x184] ss:$16 sps:$4 sm:$0xff]   ;;  %v3453_v36 = vld [vmem:[#allocation11 + $0x180] ss:$16 sps:$4 sm:$0xff]  }
  0x82   :  { %636 = vmatpush1.bf16.msra.mxu1 %v3480_v25  ;;  %v3498_v37 = vld [vmem:[#allocation11 + $0x48] ss:$16 sps:$4 sm:$0xff]   ;;  %v3502_v38 = vld [vmem:[#allocation11 + $0x2c] ss:$16 sps:$4 sm:$0xff]   ;;  %v3454_v39 = vld [vmem:[#allocation11 + $0x164] ss:$16 sps:$4 sm:$0xff]  }
  0x83   :  { %637 = vmatprep.subr.bf16.mxu1 %v3484_v26  ;;  %v3456_v40 = vld [vmem:[#allocation11 + $0x160] ss:$16 sps:$4 sm:$0xff]   ;;  %v3504_v41 = vld [vmem:[#allocation11 + $0x28] ss:$16 sps:$4 sm:$0xff]   ;;  %v3508_v42 = vld [vmem:[#allocation11 + $0xc] ss:$16 sps:$4 sm:$0xff]  }
  0x84   :  { %597 = vmatpush1.bf16.msra.mxu0 %v3429_v7  ;;  %v3457_v43 = vld [vmem:[#allocation11 + $0x144] ss:$16 sps:$4 sm:$0xff]   ;;  %v3459_v44 = vld [vmem:[#allocation11 + $0x140] ss:$16 sps:$4 sm:$0xff]   ;;  %v3510_v45 = vld [vmem:[#allocation11 + $0x8] ss:$16 sps:$4 sm:$0xff]  }
  0x85   :  { %598 = vmatprep.subr.bf16.mxu0 %v3430_v8  ;;  %v3514_v46 = vld [vmem:[#allocation11 + $0x1ec] ss:$16 sps:$4 sm:$0xff]   ;;  %v3460_v47 = vld [vmem:[#allocation11 + $0x124] ss:$16 sps:$4 sm:$0xff]   ;;  %v3462_v48 = vld [vmem:[#allocation11 + $0x120] ss:$16 sps:$4 sm:$0xff]  }
  0x86   :  { %638 = vmatpush1.bf16.msra.mxu1 %v3486_v29  ;;  %v3516_v49 = vld [vmem:[#allocation11 + $0x1e8] ss:$16 sps:$4 sm:$0xff]   ;;  %v3520_v50 = vld [vmem:[#allocation11 + $0x1cc] ss:$16 sps:$4 sm:$0xff]   ;;  %v3463_v51 = vld [vmem:[#allocation11 + $0x104] ss:$16 sps:$4 sm:$0xff]  }
  0x87   :  { %639 = vmatprep.subr.bf16.mxu1 %v3490_v30  ;;  %v3465_v52 = vld [vmem:[#allocation11 + $0x100] ss:$16 sps:$4 sm:$0xff]   ;;  %v3522_v54 = vld [vmem:[#allocation11 + $0x1c8] ss:$16 sps:$4 sm:$0xff]   ;;  %v3526_v55 = vld [vmem:[#allocation11 + $0x1ac] ss:$16 sps:$4 sm:$0xff]  }
  0x88   :  { %599 = vmatpush1.bf16.msra.mxu0 %v3432_v9  ;;  %v194_v53 = vld [vmem:[#allocation8] sm:$0xff]  ;;  %v3471_v56 = vld [vmem:[#allocation12 + $0x74] ss:$8 sps:$4 sm:$0xff]   ;;  %v3469_v57 = vld [vmem:[#allocation12 + $0x70] ss:$8 sps:$4 sm:$0xff]   ;;  %s4182_s20 = smov [#allocation21]  }
  0x89   :  { %600 = vmatprep.subr.bf16.mxu0 %v3433_v10  ;;  %v196_v58 = vpack.c.bf16 %v194_v53, %v194_v53  ;;  %v3528_v59 = vld [vmem:[#allocation11 + $0x1a8] ss:$16 sps:$4 sm:$0xff]   ;;  %v3532_v60 = vld [vmem:[#allocation11 + $0x18c] ss:$16 sps:$4 sm:$0xff]   ;;  %v3562_v20 = vld [vmem:[#allocation15 + $0xe0] ss:$16 sps:$4 sm:$0xff]  }
  0x8a   :  { %640 = vmatpush1.bf16.msra.mxu1 %v3492_v33  ;;  %v3477_v61 = vld [vmem:[#allocation12 + $0x64] ss:$8 sps:$4 sm:$0xff]   ;;  %v199_v62 = vld [vmem:[#allocation9 + $0x8] sm:$0xff]  ;;  %v3475_v1 = vld [vmem:[#allocation12 + $0x60] ss:$8 sps:$4 sm:$0xff]   ;;  %s3035_s21 = sshll.u32 %s4182_s20, 4  ;;  %s3036_s21 = int_to_ptr.vmem [resolvable:$true] %s3035_s21 }
  0x8b   :  { %641 = vmatprep.subr.bf16.mxu1 %v3496_v34  ;;  %v201_v63 = vpack.c.bf16 %v199_v62, %v199_v62  ;;  %v3534_v0 = vld [vmem:[#allocation11 + $0x188] ss:$16 sps:$4 sm:$0xff]   ;;  %v3538_v2 = vld [vmem:[#allocation11 + $0x16c] ss:$16 sps:$4 sm:$0xff]   ;;  %v3580_v33 = vld [vmem:[#allocation15 + $0x80] ss:$16 sps:$4 sm:$0xff]   ;;  %p4139_p4 = scmp.lt.s32.totalorder %s3036_s21, %s3036_s21 }
  0x8c   :  { %601 = vmatpush1.bf16.msra.mxu0 %v3435_v11  ;;  %v3483_v3 = vld [vmem:[#allocation12 + $0x54] ss:$8 sps:$4 sm:$0xff]   ;;  %v3540_v4 = vld [vmem:[#allocation11 + $0x168] ss:$16 sps:$4 sm:$0xff]   ;;  %v3489_v7 = vld [vmem:[#allocation12 + $0x44] ss:$8 sps:$4 sm:$0xff]  }
  0x8d   :  { %602 = vmatprep.subr.bf16.mxu0 %v3436_v12  ;;  %v3481_v5 = vld [vmem:[#allocation12 + $0x50] ss:$8 sps:$4 sm:$0xff]   ;;  %v3544_v6 = vld [vmem:[#allocation11 + $0x14c] ss:$16 sps:$4 sm:$0xff]   ;;  %v3487_v9 = vld [vmem:[#allocation12 + $0x40] ss:$8 sps:$4 sm:$0xff]  }
  0x8e   :  { %642 = vmatpush1.bf16.msra.mxu1 %v3498_v37  ;;  %v3546_v8 = vld [vmem:[#allocation11 + $0x148] ss:$16 sps:$4 sm:$0xff]   ;;  %v3550_v10 = vld [vmem:[#allocation11 + $0x12c] ss:$16 sps:$4 sm:$0xff]   ;;  %vm3027_vm0 = vcmask 57344   ;;  %s4134_s7 = scalar_lea.vmem %s3036_s21, 16 }
  0x8f   :  { %643 = vmatprep.subr.bf16.mxu1 %v3502_v38  ;;  %v3495_v11 = vld [vmem:[#allocation12 + $0x34] ss:$8 sps:$4 sm:$0xff]   ;;  %v3552_v12 = vld [vmem:[#allocation11 + $0x128] ss:$16 sps:$4 sm:$0xff]   ;;  %v3501_v15 = vld [vmem:[#allocation12 + $0x24] ss:$8 sps:$4 sm:$0xff]   ;;  %p4135_p3 = scmp.ne.s32.totalorder %s3036_s21, %s4134_s7 }
  0x90   :  { %603 = vmatpush1.bf16.msra.mxu0 %v3438_v13  ;;  %v3493_v13 = vld [vmem:[#allocation12 + $0x30] ss:$8 sps:$4 sm:$0xff]   ;;  %v3556_v14 = vld [vmem:[#allocation11 + $0x10c] ss:$16 sps:$4 sm:$0xff]   ;;  %v3499_v17 = vld [vmem:[#allocation12 + $0x20] ss:$8 sps:$4 sm:$0xff]  }
  0x91   :  { %604 = vmatprep.subr.bf16.mxu0 %v3439_v18  ;;  %v3558_v16 = vld [vmem:[#allocation11 + $0x108] ss:$16 sps:$4 sm:$0xff]   ;;  %v3507_v19 = vld [vmem:[#allocation12 + $0x14] ss:$8 sps:$4 sm:$0xff]   ;;  %v3513_v23 = vld [vmem:[#allocation12 + $0x4] ss:$8 sps:$4 sm:$0xff]  }
  0x92   :  { %644 = vmatpush1.bf16.msra.mxu1 %v3504_v41  ;;  %v3564_v18 = vld [vmem:[#allocation15 + $0xe4] ss:$16 sps:$4 sm:$0xff]   ;;  %v3565_v62 = vld [vmem:[#allocation15 + $0xe8] ss:$16 sps:$4 sm:$0xff]   ;;  %s4138_s22 = scalar_lea.vmem %s3036_s21, 32 }
  0x93   :  { %645 = vmatprep.subr.bf16.mxu1 %v3508_v42  ;;  %v3511_v25 = vld [vmem:[#allocation12] ss:$8 sps:$4 sm:$0xff]   ;;  %v3517_v29 = vld [vmem:[#allocation12 + $0xf0] ss:$8 sps:$4 sm:$0xff]   ;;  %v3531_v34 = vld [vmem:[#allocation12 + $0xd4] ss:$8 sps:$4 sm:$0xff]   ;;  %p4140_p5 = scmp.lt.s32.totalorder %s4138_s22, %s4134_s7 }
  0x94   :  { %605 = vmatpush1.bf16.msra.mxu0 %v3441_v21  ;;  %v3505_v21 = vld [vmem:[#allocation12 + $0x10] ss:$8 sps:$4 sm:$0xff]   ;;  %v3535_v41 = vld [vmem:[#allocation12 + $0xc0] ss:$8 sps:$4 sm:$0xff]  }
  0x95   :  { %606 = vmatprep.subr.bf16.mxu0 %v3442_v22  ;;  %v3570_v22 = vld [vmem:[#allocation15 + $0xc4] ss:$16 sps:$4 sm:$0xff]   ;;  %p4141_p6 = por %p4140_p5, %p4139_p4 }
  0x96   :  { %646 = vmatpush1.bf16.msra.mxu1 %v3510_v45  ;;  %v3576_v26 = vld [vmem:[#allocation15 + $0xa4] ss:$16 sps:$4 sm:$0xff]  }
  0x97   :  { %647 = vmatprep.subr.bf16.mxu1 %v3514_v46  ;;  %v3582_v30 = vld [vmem:[#allocation15 + $0x84] ss:$16 sps:$4 sm:$0xff]   ;;  %p4142_p7 = pnand %p4141_p6, %p4135_p3 }
  0x98   :  { %607 = vmatpush2.bf16.msra.mxu0 %v3444_v24  ;;  %v3568_v24 = vld [vmem:[#allocation15 + $0xc0] ss:$16 sps:$4 sm:$0xff]   ;;  %v3594_v38 = vld [vmem:[#allocation15 + $0x44] ss:$16 sps:$4 sm:$0xff]  }
  0x99   :  { %608 = vmatprep.subr.bf16.mxu0 %v3445_v27  ;;  %v3519_v27 = vld [vmem:[#allocation12 + $0xf4] ss:$8 sps:$4 sm:$0xff]   ;;  %v3529_v37 = vld [vmem:[#allocation12 + $0xd0] ss:$8 sps:$4 sm:$0xff]  }
  0x9a   :  { %648 = vmatpush2.bf16.msra.mxu1 %v3516_v49  ;;  %v3600_v42 = vld [vmem:[#allocation15 + $0x24] ss:$16 sps:$4 sm:$0xff]  }
  0x9b   :  { %649 = vmatprep.subr.bf16.mxu1 %v3520_v50  ;;  %v3541_v45 = vld [vmem:[#allocation12 + $0xb0] ss:$8 sps:$4 sm:$0xff]   ;;  %v3547_v49 = vld [vmem:[#allocation12 + $0xa0] ss:$8 sps:$4 sm:$0xff]  }
  0x9c   :  { %609 = vmatpush2.bf16.msra.mxu0 %v3447_v28  ;;  %v3574_v28 = vld [vmem:[#allocation15 + $0xa0] ss:$16 sps:$4 sm:$0xff]   ;;  %v3606_v46 = vld [vmem:[#allocation15 + $0x4] ss:$16 sps:$4 sm:$0xff]  }
  0x9d   :  { %610 = vmatprep.subr.bf16.mxu0 %v3448_v31  ;;  %v3525_v31 = vld [vmem:[#allocation12 + $0xe4] ss:$8 sps:$4 sm:$0xff]   ;;  %v3553_v53 = vld [vmem:[#allocation12 + $0x90] ss:$8 sps:$4 sm:$0xff]  }
  0x9e   :  { %650 = vmatpush2.bf16.msra.mxu1 %v3522_v54  ;;  %v3612_v50 = vld [vmem:[#allocation15 + $0x1e4] ss:$16 sps:$4 sm:$0xff]  }
  0x9f   :  { %651 = vmatprep.subr.bf16.mxu1 %v3526_v55  ;;  %v3618_v54 = vld [vmem:[#allocation15 + $0x1c4] ss:$16 sps:$4 sm:$0xff]  }
  0xa0   :  { %611 = vmatpush2.bf16.msra.mxu0 %v3450_v32  ;;  %v3523_v32 = vld [vmem:[#allocation12 + $0xe0] ss:$8 sps:$4 sm:$0xff]   ;;  %v3561_v55 = vld [vmem:[#allocation12 + $0x84] ss:$8 sps:$4 sm:$0xff]  }
  0xa1   :  { %612 = vmatprep.subr.bf16.mxu0 %v3451_v35  ;;  %v3588_v35 = vld [vmem:[#allocation15 + $0x64] ss:$16 sps:$4 sm:$0xff]  }
  0xa2   :  { %652 = vmatpush2.bf16.msra.mxu1 %v3528_v59  ;;  %v3624_v59 = vld [vmem:[#allocation15 + $0x1a4] ss:$16 sps:$4 sm:$0xff]  }
  0xa3   :  { %653 = vmatprep.subr.bf16.mxu1 %v3532_v60  ;;  %v3567_v60 = vld [vmem:[#allocation15 + $0xec] ss:$16 sps:$4 sm:$0xff]  }
  0xa4   :  { %613 = vmatpush2.bf16.msra.mxu0 %v3453_v36  ;;  %v3586_v36 = vld [vmem:[#allocation15 + $0x60] ss:$16 sps:$4 sm:$0xff]  }
  0xa5   :  { %614 = vmatprep.subr.bf16.mxu0 %v3454_v39  ;;  %v3537_v39 = vld [vmem:[#allocation12 + $0xc4] ss:$8 sps:$4 sm:$0xff]  }
  0xa6   :  { %654 = vmatpush2.bf16.msra.mxu1 %v3534_v0 }
  0xa7   :  { %655 = vmatprep.subr.bf16.mxu1 %v3538_v2  ;;  %v3571_v2 = vld [vmem:[#allocation15 + $0xc8] ss:$16 sps:$4 sm:$0xff]  }
  0xa8   :  { %615 = vmatpush2.bf16.msra.mxu0 %v3456_v40  ;;  %v3592_v40 = vld [vmem:[#allocation15 + $0x40] ss:$16 sps:$4 sm:$0xff]  }
  0xa9   :  { %616 = vmatprep.subr.bf16.mxu0 %v3457_v43  ;;  %v3543_v43 = vld [vmem:[#allocation12 + $0xb4] ss:$8 sps:$4 sm:$0xff]  }
  0xaa   :  { %656 = vmatpush2.bf16.msra.mxu1 %v3540_v4  ;;  %v3636_v4 = vld [vmem:[#allocation15 + $0x164] ss:$16 sps:$4 sm:$0xff]  }
  0xab   :  { %657 = vmatprep.subr.bf16.mxu1 %v3544_v6  ;;  %v3577_v6 = vld [vmem:[#allocation15 + $0xa8] ss:$16 sps:$4 sm:$0xff]  }
  0xac   :  { %617 = vmatpush2.bf16.msra.mxu0 %v3459_v44  ;;  %v3598_v44 = vld [vmem:[#allocation15 + $0x20] ss:$16 sps:$4 sm:$0xff]  }
  0xad   :  { %618 = vmatprep.subr.bf16.mxu0 %v3460_v47  ;;  %v3549_v47 = vld [vmem:[#allocation12 + $0xa4] ss:$8 sps:$4 sm:$0xff]  }
  0xae   :  { %658 = vmatpush2.bf16.msra.mxu1 %v3546_v8  ;;  %v3642_v8 = vld [vmem:[#allocation15 + $0x144] ss:$16 sps:$4 sm:$0xff]  }
  0xaf   :  { %659 = vmatprep.subr.bf16.mxu1 %v3550_v10  ;;  %v3583_v10 = vld [vmem:[#allocation15 + $0x88] ss:$16 sps:$4 sm:$0xff]  }
  0xb0   :  { %619 = vmatpush2.bf16.msra.mxu0 %v3462_v48  ;;  %v3604_v48 = vld [vmem:[#allocation15] ss:$16 sps:$4 sm:$0xff]  }
  0xb1   :  { %620 = vmatprep.subr.bf16.mxu0 %v3463_v51  ;;  %v3555_v51 = vld [vmem:[#allocation12 + $0x94] ss:$8 sps:$4 sm:$0xff]  }
  0xb2   :  { %660 = vmatpush2.bf16.msra.mxu1 %v3552_v12  ;;  %v3648_v12 = vld [vmem:[#allocation15 + $0x124] ss:$16 sps:$4 sm:$0xff]  }
  0xb3   :  { %661 = vmatprep.subr.bf16.mxu1 %v3556_v14  ;;  %v3646_v14 = vld [vmem:[#allocation15 + $0x120] ss:$16 sps:$4 sm:$0xff]  }
  0xb4   :  { %621 = vmatpush2.bf16.msra.mxu0 %v3465_v52  ;;  %v3610_v52 = vld [vmem:[#allocation15 + $0x1e0] ss:$16 sps:$4 sm:$0xff]  }
  0xb5   :  { %874 = vmatprep.subr.bf16.mxu0 %v3471_v56  ;;  %v3616_v56 = vld [vmem:[#allocation15 + $0x1c0] ss:$16 sps:$4 sm:$0xff]  }
  0xb6   :  { %662 = vmatpush2.bf16.msra.mxu1 %v3558_v16  ;;  %v3654_v16 = vld [vmem:[#allocation15 + $0x104] ss:$16 sps:$4 sm:$0xff]  }
  0xb7   :  { %623 = vmatmul.mubr.bf16.vlgmr.msra.gmra.mxu0 %v196_v58  ;;  %1389 = vmatprep.subr.bf16.mxu1 %v3564_v18  ;;  %v3652_v18 = vld [vmem:[#allocation15 + $0x100] ss:$16 sps:$4 sm:$0xff]  }
  0xb8   :  { %875 = vmatpush1.bf16.msra.mxu0 %v3469_v57  ;;  %906 = vmatprep.mubr.bf16.mxu0 %v201_v63  ;;  %v3559_v57 = vld [vmem:[#allocation12 + $0x80] ss:$8 sps:$4 sm:$0xff]  }
  0xb9   :  { %876 = vmatprep.subr.bf16.mxu0 %v3477_v61  ;;  %664 = vmatmul.mubr.bf16.vlgmr.msra.gmra.mxu1 %v196_v58  ;;  %v198_v58 = vld [vmem:[#allocation9] sm:$0xff] }
  0xba   :  { %1390 = vmatpush1.bf16.msra.mxu1 %v3562_v20  ;;  %v3622_v61 = vld [vmem:[#allocation15 + $0x1a0] ss:$16 sps:$4 sm:$0xff]   ;;  %v3630_v63 = vld [vmem:[#allocation15 + $0x184] ss:$16 sps:$4 sm:$0xff]   ;;  %v200_v0 = vpack.c.bf16 %v198_v58, %v198_v58  ;;  %v3603_v20 = vld [vmem:[#allocation15 + $0x2c] ss:$16 sps:$4 sm:$0xff]  }
  0xbb   :  { %1391 = vmatprep.subr.bf16.mxu1 %v3570_v22  ;;  %v3609_v22 = vld [vmem:[#allocation15 + $0xc] ss:$16 sps:$4 sm:$0xff]  }
  0xbc   :  { %877 = vmatpush1.bf16.msra.mxu0 %v3475_v1  ;;  %v3573_v1 = vld [vmem:[#allocation15 + $0xcc] ss:$16 sps:$4 sm:$0xff]  }
  0xbd   :  { %878 = vmatprep.subr.bf16.mxu0 %v3483_v3  ;;  %v3628_v3 = vld [vmem:[#allocation15 + $0x180] ss:$16 sps:$4 sm:$0xff]  }
  0xbe   :  { %1392 = vmatpush1.bf16.msra.mxu1 %v3568_v24  ;;  %v3615_v24 = vld [vmem:[#allocation15 + $0x1ec] ss:$16 sps:$4 sm:$0xff]  }
  0xbf   :  { %1393 = vmatprep.subr.bf16.mxu1 %v3576_v26  ;;  %v3621_v26 = vld [vmem:[#allocation15 + $0x1cc] ss:$16 sps:$4 sm:$0xff]  }
  0xc0   :  { %879 = vmatpush1.bf16.msra.mxu0 %v3481_v5  ;;  %v3579_v5 = vld [vmem:[#allocation15 + $0xac] ss:$16 sps:$4 sm:$0xff]  }
  0xc1   :  { %880 = vmatprep.subr.bf16.mxu0 %v3489_v7  ;;  %v3634_v7 = vld [vmem:[#allocation15 + $0x160] ss:$16 sps:$4 sm:$0xff]  }
  0xc2   :  { %1394 = vmatpush1.bf16.msra.mxu1 %v3574_v28  ;;  %v3627_v28 = vld [vmem:[#allocation15 + $0x1ac] ss:$16 sps:$4 sm:$0xff]  }
  0xc3   :  { %1395 = vmatprep.subr.bf16.mxu1 %v3582_v30  ;;  %v3633_v30 = vld [vmem:[#allocation15 + $0x18c] ss:$16 sps:$4 sm:$0xff]  }
  0xc4   :  { %881 = vmatpush1.bf16.msra.mxu0 %v3487_v9  ;;  %v3585_v9 = vld [vmem:[#allocation15 + $0x8c] ss:$16 sps:$4 sm:$0xff]  }
  0xc5   :  { %882 = vmatprep.subr.bf16.mxu0 %v3495_v11  ;;  %v3640_v11 = vld [vmem:[#allocation15 + $0x140] ss:$16 sps:$4 sm:$0xff]  }
  0xc6   :  { %1396 = vmatpush1.bf16.msra.mxu1 %v3580_v33  ;;  %v3637_v33 = vld [vmem:[#allocation15 + $0x168] ss:$16 sps:$4 sm:$0xff]  }
  0xc7   :  { %1397 = vmatprep.subr.bf16.mxu1 %v3588_v35  ;;  %v3643_v35 = vld [vmem:[#allocation15 + $0x148] ss:$16 sps:$4 sm:$0xff]  }
  0xc8   :  { %883 = vmatpush1.bf16.msra.mxu0 %v3493_v13  ;;  %v3591_v13 = vld [vmem:[#allocation15 + $0x6c] ss:$16 sps:$4 sm:$0xff]  }
  0xc9   :  { %884 = vmatprep.subr.bf16.mxu0 %v3501_v15  ;;  %v3589_v15 = vld [vmem:[#allocation15 + $0x68] ss:$16 sps:$4 sm:$0xff]  }
  0xca   :  { %1398 = vmatpush1.bf16.msra.mxu1 %v3586_v36  ;;  %v3651_v36 = vld [vmem:[#allocation15 + $0x12c] ss:$16 sps:$4 sm:$0xff]  }
  0xcb   :  { %1399 = vmatprep.subr.bf16.mxu1 %v3594_v38  ;;  %v3657_v38 = vld [vmem:[#allocation15 + $0x10c] ss:$16 sps:$4 sm:$0xff]  }
  0xcc   :  { %885 = vmatpush1.bf16.msra.mxu0 %v3499_v17  ;;  %v3597_v17 = vld [vmem:[#allocation15 + $0x4c] ss:$16 sps:$4 sm:$0xff]  }
  0xcd   :  { %886 = vmatprep.subr.bf16.mxu0 %v3507_v19  ;;  %v3595_v19 = vld [vmem:[#allocation15 + $0x48] ss:$16 sps:$4 sm:$0xff]  }
  0xce   :  { %1400 = vmatpush1.bf16.msra.mxu1 %v3592_v40  ;;  %v3660_v40 = vld [vmem:[#allocation17 + $0x74] ss:$8 sps:$4 sm:$0xff]  }
  0xcf   :  { %1401 = vmatprep.subr.bf16.mxu1 %v3600_v42  ;;  %v929_v42 = vlaneseq }
  0xd0   :  { %887 = vmatpush1.bf16.msra.mxu0 %v3505_v21  ;;  %v3601_v21 = vld [vmem:[#allocation15 + $0x28] ss:$16 sps:$4 sm:$0xff]  }
  0xd1   :  { %888 = vmatprep.subr.bf16.mxu0 %v3513_v23  ;;  %v3607_v23 = vld [vmem:[#allocation15 + $0x8] ss:$16 sps:$4 sm:$0xff]  }
  0xd2   :  { %1402 = vmatpush1.bf16.msra.mxu1 %v3598_v44 }
  0xd3   :  { %1403 = vmatprep.subr.bf16.mxu1 %v3606_v46 }
  0xd4   :  { %889 = vmatpush1.bf16.msra.mxu0 %v3511_v25  ;;  %v3613_v25 = vld [vmem:[#allocation15 + $0x1e8] ss:$16 sps:$4 sm:$0xff]  }
  0xd5   :  { %890 = vmatprep.subr.bf16.mxu0 %v3519_v27  ;;  %v3619_v27 = vld [vmem:[#allocation15 + $0x1c8] ss:$16 sps:$4 sm:$0xff]  }
  0xd6   :  { %1404 = vmatpush1.bf16.msra.mxu1 %v3604_v48 }
  0xd7   :  { %1405 = vmatprep.subr.bf16.mxu1 %v3612_v50 }
  0xd8   :  { %891 = vmatpush2.bf16.msra.mxu0 %v3517_v29  ;;  %v3625_v29 = vld [vmem:[#allocation15 + $0x1a8] ss:$16 sps:$4 sm:$0xff]  }
  0xd9   :  { %892 = vmatprep.subr.bf16.mxu0 %v3525_v31  ;;  %v3631_v31 = vld [vmem:[#allocation15 + $0x188] ss:$16 sps:$4 sm:$0xff]  }
  0xda   :  { %1406 = vmatpush2.bf16.msra.mxu1 %v3610_v52 }
  0xdb   :  { %1407 = vmatprep.subr.bf16.mxu1 %v3618_v54 }
  0xdc   :  { %893 = vmatpush2.bf16.msra.mxu0 %v3523_v32  ;;  %v3639_v32 = vld [vmem:[#allocation15 + $0x16c] ss:$16 sps:$4 sm:$0xff]  }
  0xdd   :  { %894 = vmatprep.subr.bf16.mxu0 %v3531_v34  ;;  %v3645_v34 = vld [vmem:[#allocation15 + $0x14c] ss:$16 sps:$4 sm:$0xff]  }
  0xde   :  { %1408 = vmatpush2.bf16.msra.mxu1 %v3616_v56 }
  0xdf   :  { %1409 = vmatprep.subr.bf16.mxu1 %v3624_v59 }
  0xe0   :  { %895 = vmatpush2.bf16.msra.mxu0 %v3529_v37  ;;  %v3649_v37 = vld [vmem:[#allocation15 + $0x128] ss:$16 sps:$4 sm:$0xff]  }
  0xe1   :  { %896 = vmatprep.subr.bf16.mxu0 %v3537_v39  ;;  %v3655_v39 = vld [vmem:[#allocation15 + $0x108] ss:$16 sps:$4 sm:$0xff]  }
  0xe2   :  { %1410 = vmatpush2.bf16.msra.mxu1 %v3622_v61  ;;  %v3661_v61 = vld [vmem:[#allocation17 + $0x170] ss:$8 sps:$4 sm:$0xff]  }
  0xe3   :  { %1411 = vmatprep.subr.bf16.mxu1 %v3630_v63  ;;  %v3666_v63 = vld [vmem:[#allocation17 + $0x64] ss:$8 sps:$4 sm:$0xff]  }
  0xe4   :  { %897 = vmatpush2.bf16.msra.mxu0 %v3535_v41  ;;  %v3663_v41 = vld [vmem:[#allocation17 + $0x174] ss:$8 sps:$4 sm:$0xff]  }
  0xe5   :  { %898 = vmatprep.subr.bf16.mxu0 %v3543_v43  ;;  %v4322_v43 = vshrl.u32 %v929_v42, 7 }
  0xe6   :  { %1412 = vmatpush2.bf16.msra.mxu1 %v3628_v3  ;;  %v3672_v3 = vld [vmem:[#allocation17 + $0x54] ss:$8 sps:$4 sm:$0xff]  }
  0xe7   :  { %1413 = vmatprep.subr.bf16.mxu1 %v3636_v4  ;;  %v4325_v44 = vsub.s32 0, %v4322_v43  ;;  %v4331_v46 = vsub.s32 1, %v4322_v43  ;;  %v3675_v4 = vld [vmem:[#allocation17 + $0x154] ss:$8 sps:$4 sm:$0xff]  }
  0xe8   :  { %899 = vmatpush2.bf16.msra.mxu0 %v3541_v45  ;;  %v927_v45 = vld [vmem:[%s4404_s5] sm:$0xf] }
  0xe9   :  { %900 = vmatprep.subr.bf16.mxu0 %v3549_v47  ;;  %v932_v47 = vrot.slane %v927_v45, %v4325_v44  ;;  %v936_v48 = vrot.slane %v927_v45, %v4331_v46 }
  0xea   :  { %1414 = vmatpush2.bf16.msra.mxu1 %v3634_v7  ;;  %v3673_v7 = vld [vmem:[#allocation17 + $0x150] ss:$8 sps:$4 sm:$0xff]  }
  0xeb   :  { %1415 = vmatprep.subr.bf16.mxu1 %v3642_v8  ;;  %v4339_v8 = vsub.s32 3, %v4322_v43 }
  0xec   :  { %901 = vmatpush2.bf16.msra.mxu0 %v3547_v49 }
  0xed   :  { %902 = vmatprep.subr.bf16.mxu0 %v3555_v51 }
  0xee   :  { %1416 = vmatpush2.bf16.msra.mxu1 %v3640_v11 }
  0xef   :  { %1417 = vmatprep.subr.bf16.mxu1 %v3648_v12  ;;  %v3676_v12 = vld [vmem:[#allocation17 + $0x40] ss:$8 sps:$4 sm:$0xff]  }
  0xf0   :  { %903 = vmatpush2.bf16.msra.mxu0 %v3553_v53 }
  0xf1   :  { %904 = vmatprep.subr.bf16.mxu0 %v3561_v55 }
  0xf2   :  { %1418 = vmatpush2.bf16.msra.mxu1 %v3646_v14  ;;  %v944_v14 = vrot.slane %v927_v45, %v4339_v8 }
  0xf3   :  { %1419 = vmatprep.subr.bf16.mxu1 %v3654_v16  ;;  %v3687_v16 = vld [vmem:[#allocation17 + $0x134] ss:$8 sps:$4 sm:$0xff]  }
  0xf4   :  { %905 = vmatpush2.bf16.msra.mxu0 %v3559_v57 }
  0xf5   :  { %1430 = vmatprep.subr.bf16.mxu0 %v3567_v60  ;;  %v3658_v60 = vld [vmem:[#allocation17 + $0x70] ss:$8 sps:$4 sm:$0xff]  }
  0xf6   :  { %1420 = vmatpush2.bf16.msra.mxu1 %v3652_v18 }
  0xf7   :  { %907 = vmatmul.mubr.bf16.vlgmr.msra.gmra.mxu0 %v200_v0  ;;  %1879 = vmatprep.subr.bf16.mxu1 %v3660_v40  ;;  %v3669_v0 = vld [vmem:[#allocation17 + $0x164] ss:$8 sps:$4 sm:$0xff]   ;;  %v3709_v40 = vld [vmem:[#allocation17 + $0x1f0] ss:$8 sps:$4 sm:$0xff]  }
  0xf8   :  { %1431 = vmatpush1.bf16.msra.mxu0 %v3565_v62 }
  0xf9   :  { %1432 = vmatprep.subr.bf16.mxu0 %v3573_v1  ;;  %v3664_v1 = vld [vmem:[#allocation17 + $0x60] ss:$8 sps:$4 sm:$0xff]  }
  0xfc   :  { %1433 = vmatpush1.bf16.msra.mxu0 %v3571_v2  ;;  %v3667_v2 = vld [vmem:[#allocation17 + $0x160] ss:$8 sps:$4 sm:$0xff]  }
  0xfd   :  { %1434 = vmatprep.subr.bf16.mxu0 %v3579_v5  ;;  %v4336_v5 = vsub.s32 2, %v4322_v43 }
  0xff   :  { %v940_v11 = vrot.slane %v927_v45, %v4336_v5  ;;  %v3717_v45 = vld [vmem:[#allocation17 + $0x1e4] ss:$8 sps:$4 sm:$0xff]  }
 0x100   :  { %1435 = vmatpush1.bf16.msra.mxu0 %v3577_v6  ;;  %v3670_v6 = vld [vmem:[#allocation17 + $0x50] ss:$8 sps:$4 sm:$0xff]  }
 0x101   :  { %1436 = vmatprep.subr.bf16.mxu0 %v3585_v9  ;;  %v3678_v9 = vld [vmem:[#allocation17 + $0x44] ss:$8 sps:$4 sm:$0xff]  }
 0x104   :  { %1437 = vmatpush1.bf16.msra.mxu0 %v3583_v10  ;;  %v3681_v10 = vld [vmem:[#allocation17 + $0x144] ss:$8 sps:$4 sm:$0xff]  }
 0x105   :  { %1438 = vmatprep.subr.bf16.mxu0 %v3591_v13  ;;  %v3679_v13 = vld [vmem:[#allocation17 + $0x140] ss:$8 sps:$4 sm:$0xff]  }
 0x108   :  { %1439 = vmatpush1.bf16.msra.mxu0 %v3589_v15  ;;  %v3684_v15 = vld [vmem:[#allocation17 + $0x34] ss:$8 sps:$4 sm:$0xff]  }
 0x109   :  { %1440 = vmatprep.subr.bf16.mxu0 %v3597_v17 }
 0x10c   :  { %1441 = vmatpush1.bf16.msra.mxu0 %v3595_v19 }
 0x10d   :  { %1442 = vmatprep.subr.bf16.mxu0 %v3603_v20  ;;  %v3682_v20 = vld [vmem:[#allocation17 + $0x30] ss:$8 sps:$4 sm:$0xff]  }
 0x110   :  { %1443 = vmatpush1.bf16.msra.mxu0 %v3601_v21  ;;  %v3685_v21 = vld [vmem:[#allocation17 + $0x130] ss:$8 sps:$4 sm:$0xff]  }
 0x111   :  { %1444 = vmatprep.subr.bf16.mxu0 %v3609_v22 }
 0x114   :  { %1445 = vmatpush1.bf16.msra.mxu0 %v3607_v23  ;;  %v3690_v23 = vld [vmem:[#allocation17 + $0x24] ss:$8 sps:$4 sm:$0xff]  }
 0x115   :  { %1446 = vmatprep.subr.bf16.mxu0 %v3615_v24  ;;  %v3693_v24 = vld [vmem:[#allocation17 + $0x124] ss:$8 sps:$4 sm:$0xff]  }
 0x118   :  { %1447 = vmatpush2.bf16.msra.mxu0 %v3613_v25 }
 0x119   :  { %1448 = vmatprep.subr.bf16.mxu0 %v3621_v26 }
 0x11c   :  { %1449 = vmatpush2.bf16.msra.mxu0 %v3619_v27  ;;  %v3688_v27 = vld [vmem:[#allocation17 + $0x20] ss:$8 sps:$4 sm:$0xff]  }
 0x11d   :  { %1450 = vmatprep.subr.bf16.mxu0 %v3627_v28  ;;  %v3691_v28 = vld [vmem:[#allocation17 + $0x120] ss:$8 sps:$4 sm:$0xff]  }
 0x120   :  { %1451 = vmatpush2.bf16.msra.mxu0 %v3625_v29  ;;  %v3696_v29 = vld [vmem:[#allocation17 + $0x14] ss:$8 sps:$4 sm:$0xff]  }
 0x121   :  { %1452 = vmatprep.subr.bf16.mxu0 %v3633_v30  ;;  %v3699_v30 = vld [vmem:[#allocation17 + $0x114] ss:$8 sps:$4 sm:$0xff]  }
 0x124   :  { %1453 = vmatpush2.bf16.msra.mxu0 %v3631_v31  ;;  %v3694_v31 = vld [vmem:[#allocation17 + $0x10] ss:$8 sps:$4 sm:$0xff]  }
 0x125   :  { %1454 = vmatprep.subr.bf16.mxu0 %v3639_v32  ;;  %v3697_v32 = vld [vmem:[#allocation17 + $0x110] ss:$8 sps:$4 sm:$0xff]  }
 0x128   :  { %1455 = vmatpush2.bf16.msra.mxu0 %v3637_v33  ;;  %v3702_v33 = vld [vmem:[#allocation17 + $0x4] ss:$8 sps:$4 sm:$0xff]  }
 0x129   :  { %1456 = vmatprep.subr.bf16.mxu0 %v3645_v34  ;;  %v3705_v34 = vld [vmem:[#allocation17 + $0x104] ss:$8 sps:$4 sm:$0xff]  }
 0x12c   :  { %1457 = vmatpush2.bf16.msra.mxu0 %v3643_v35  ;;  %v3700_v35 = vld [vmem:[#allocation17] ss:$8 sps:$4 sm:$0xff]  }
 0x12d   :  { %1458 = vmatprep.subr.bf16.mxu0 %v3651_v36  ;;  %v3703_v36 = vld [vmem:[#allocation17 + $0x100] ss:$8 sps:$4 sm:$0xff]  }
 0x130   :  { %1459 = vmatpush2.bf16.msra.mxu0 %v3649_v37  ;;  %v3708_v37 = vld [vmem:[#allocation17 + $0xf4] ss:$8 sps:$4 sm:$0xff]  }
 0x131   :  { %1460 = vmatprep.subr.bf16.mxu0 %v3657_v38  ;;  %v3711_v38 = vld [vmem:[#allocation17 + $0x1f4] ss:$8 sps:$4 sm:$0xff]  }
 0x134   :  { %1461 = vmatpush2.bf16.msra.mxu0 %v3655_v39  ;;  %v3706_v39 = vld [vmem:[#allocation17 + $0xf0] ss:$8 sps:$4 sm:$0xff]  }
 0x135   :  { %1920 = vmatprep.subr.bf16.mxu0 %v3663_v41  ;;  %v3714_v41 = vld [vmem:[#allocation17 + $0xe4] ss:$8 sps:$4 sm:$0xff]  }
 0x177   :  { %v624_v49 = vpop.f32.mrf.mxu0 }
 0x178   :  { %v949_v50 = vadd.f32 %v932_v47, %v624_v49  ;;  %v3712_v47 = vld [vmem:[#allocation17 + $0xe0] ss:$8 sps:$4 sm:$0xff]   ;;  %v3720_v49 = vld [vmem:[#allocation17 + $0xd4] ss:$8 sps:$4 sm:$0xff]  }
 0x179   :  { %v626_v51 = vpop.f32.mrf.mxu0  ;;  %v665_v17 = vpop.f32.mrf.mxu1 }
 0x17a   :  { %v953_v52 = vmul.f32 0.01, %v949_v50  ;;  %v950_v53 = vadd.f32 %v936_v48, %v626_v51  ;;  %v4343_v18 = vadd.f32 %v940_v11, %v665_v17  ;;  %v3715_v48 = vld [vmem:[#allocation17 + $0x1e0] ss:$8 sps:$4 sm:$0xff]   ;;  %v3718_v51 = vld [vmem:[#allocation17 + $0xd0] ss:$8 sps:$4 sm:$0xff]  }
 0x17b   :  { %v628_v54 = vpop.f32.mrf.mxu0  ;;  %v667_v19 = vpop.f32.mrf.mxu1 }
 0x17c   :  { %v954_v55 = vmul.f32 0.01, %v950_v53  ;;  %v957_v56 = vmax.f32 %v949_v50, %v953_v52  ;;  %v4345_v22 = vadd.f32 %v944_v14, %v667_v19  ;;  %v3723_v50 = vld [vmem:[#allocation17 + $0x1d4] ss:$8 sps:$4 sm:$0xff]   ;;  %v3721_v52 = vld [vmem:[#allocation17 + $0x1d0] ss:$8 sps:$4 sm:$0xff]  }
 0x17d   :  { %v629_v57 = vpop.f32.mrf.mxu0  ;;  %v669_v25 = vpop.f32.mrf.mxu1  ;;  %v3729_v54 = vld [vmem:[#allocation17 + $0x1c4] ss:$8 sps:$4 sm:$0xff]  }
 0x17e   :  { %v958_v58 = vmax.f32 %v950_v53, %v954_v55  ;;  %v981_v62 = vpack.c.bf16 %v957_v56, %v957_v56  ;;  %v3726_v53 = vld [vmem:[#allocation17 + $0xc4] ss:$8 sps:$4 sm:$0xff]   ;;  %v3724_v55 = vld [vmem:[#allocation17 + $0xc0] ss:$8 sps:$4 sm:$0xff]   ;;  %v3732_v57 = vld [vmem:[#allocation17 + $0xb4] ss:$8 sps:$4 sm:$0xff]  }
 0x17f   :  { %v670_v26 = vpop.f32.mrf.mxu1  ;;  %v3727_v56 = vld [vmem:[#allocation17 + $0x1c0] ss:$8 sps:$4 sm:$0xff]   ;;  %v3747_v25 = vld [vmem:[#allocation17 + $0x194] ss:$8 sps:$4 sm:$0xff]  }
 0x180   :  { %v982_v59 = vpack.c.bf16 %v958_v58, %v958_v58  ;;  %v3735_v58 = vld [vmem:[#allocation17 + $0x1b4] ss:$8 sps:$4 sm:$0xff]   ;;  %v3742_v26 = vld [vmem:[#allocation17 + $0x90] ss:$8 sps:$4 sm:$0xff]  }
 0x182   :  { %1421 = vmatprep.mubr.bf16.mxu1 %v982_v59  ;;  %1462 = vmatprep.mubr.bf16.mxu0 %v982_v59  ;;  %v3730_v59 = vld [vmem:[#allocation17 + $0xb0] ss:$8 sps:$4 sm:$0xff]  }
 0x183   :  { %1422 = vmatmul.mubr.bf16.vlgmr.msra.gmra.mxu1 %v981_v62  ;;  %1463 = vmatmul.mubr.bf16.vlgmr.msra.gmra.mxu0 %v981_v62  ;;  %v3738_v62 = vld [vmem:[#allocation17 + $0xa4] ss:$8 sps:$4 sm:$0xff]  }
 0x184   :  { %1880 = vmatpush1.bf16.msra.mxu1 %v3658_v60  ;;  %1921 = vmatpush1.bf16.msra.mxu0 %v3661_v61  ;;  %v3733_v60 = vld [vmem:[#allocation17 + $0x1b0] ss:$8 sps:$4 sm:$0xff]   ;;  %v963_v61 = vld [vmem:[#allocation14] sm:$0x3] }
 0x185   :  { %1881 = vmatprep.subr.bf16.mxu1 %v3666_v63  ;;  %1922 = vmatprep.subr.bf16.mxu0 %v3669_v0  ;;  %v3741_v63 = vld [vmem:[#allocation17 + $0x1a4] ss:$8 sps:$4 sm:$0xff]   ;;  %v968_v0 = vrot.slane %v963_v61, %v4325_v44 }
 0x188   :  { %1882 = vmatpush1.bf16.msra.mxu1 %v3664_v1  ;;  %1923 = vmatpush1.bf16.msra.mxu0 %v3667_v2  ;;  %v3736_v1 = vld [vmem:[#allocation17 + $0xa0] ss:$8 sps:$4 sm:$0xff]  }
 0x189   :  { %1883 = vmatprep.subr.bf16.mxu1 %v3672_v3  ;;  %1924 = vmatprep.subr.bf16.mxu0 %v3675_v4  ;;  %v3739_v2 = vld [vmem:[#allocation17 + $0x1a0] ss:$8 sps:$4 sm:$0xff]   ;;  %v955_v3 = vmul.f32 0.01, %v4343_v18  ;;  %v972_v4 = vrot.slane %v963_v61, %v4331_v46 }
 0x18b   :  { %v959_v11 = vmax.f32 %v4343_v18, %v955_v3  ;;  %v3750_v18 = vld [vmem:[#allocation17 + $0x84] ss:$8 sps:$4 sm:$0xff]  }
 0x18c   :  { %1884 = vmatpush1.bf16.msra.mxu1 %v3670_v6  ;;  %1925 = vmatpush1.bf16.msra.mxu0 %v3673_v7  ;;  %v956_v7 = vmul.f32 0.01, %v4345_v22  ;;  %v3762_v3 = vld [vmem:[#allocation18 + $0xc4] ss:$16 sps:$4 sm:$0xff]  }
 0x18d   :  { %1885 = vmatprep.subr.bf16.mxu1 %v3678_v9  ;;  %1926 = vmatprep.subr.bf16.mxu0 %v3681_v10 }
 0x190   :  { %1886 = vmatpush1.bf16.msra.mxu1 %v3676_v12  ;;  %1927 = vmatpush1.bf16.msra.mxu0 %v3679_v13 }
 0x191   :  { %1887 = vmatprep.subr.bf16.mxu1 %v3684_v15  ;;  %1928 = vmatprep.subr.bf16.mxu0 %v3687_v16  ;;  %v960_v15 = vmax.f32 %v4345_v22, %v956_v7  ;;  %v3756_v22 = vld [vmem:[#allocation18 + $0xe4] ss:$16 sps:$4 sm:$0xff]   ;;  %v3763_v7 = vld [vmem:[#allocation18 + $0xc8] ss:$16 sps:$4 sm:$0xff]  }
 0x194   :  { %1888 = vmatpush1.bf16.msra.mxu1 %v3682_v20  ;;  %1929 = vmatpush1.bf16.msra.mxu0 %v3685_v21 }
 0x195   :  { %1889 = vmatprep.subr.bf16.mxu1 %v3690_v23  ;;  %1930 = vmatprep.subr.bf16.mxu0 %v3693_v24  ;;  %v3744_v24 = vld [vmem:[#allocation17 + $0x94] ss:$8 sps:$4 sm:$0xff]  }
 0x198   :  { %1890 = vmatpush1.bf16.msra.mxu1 %v3688_v27  ;;  %1931 = vmatpush1.bf16.msra.mxu0 %v3691_v28  ;;  %v3745_v27 = vld [vmem:[#allocation17 + $0x190] ss:$8 sps:$4 sm:$0xff]   ;;  %v3753_v28 = vld [vmem:[#allocation17 + $0x184] ss:$8 sps:$4 sm:$0xff]  }
 0x199   :  { %1891 = vmatprep.subr.bf16.mxu1 %v3696_v29  ;;  %1932 = vmatprep.subr.bf16.mxu0 %v3699_v30  ;;  %v3748_v29 = vld [vmem:[#allocation17 + $0x80] ss:$8 sps:$4 sm:$0xff]  }
 0x19a   :  { %v3751_v30 = vld [vmem:[#allocation17 + $0x180] ss:$8 sps:$4 sm:$0xff]  }
 0x19c   :  { %1892 = vmatpush1.bf16.msra.mxu1 %v3694_v31  ;;  %1933 = vmatpush1.bf16.msra.mxu0 %v3697_v32  ;;  %v3759_v31 = vld [vmem:[#allocation18 + $0xec] ss:$16 sps:$4 sm:$0xff]   ;;  %v1047_v32 = vld [vmem:[%s4407_s8] sm:$0xf] }
 0x19d   :  { %1893 = vmatprep.subr.bf16.mxu1 %v3702_v33  ;;  %1934 = vmatprep.subr.bf16.mxu0 %v3705_v34  ;;  %v1052_v33 = vrot.slane %v1047_v32, %v4325_v44  ;;  %v1060_v34 = vrot.slane %v1047_v32, %v4336_v5 }
 0x1a0   :  { %1894 = vmatpush1.bf16.msra.mxu1 %v3700_v35  ;;  %1935 = vmatpush1.bf16.msra.mxu0 %v3703_v36  ;;  %v1056_v35 = vrot.slane %v1047_v32, %v4331_v46  ;;  %v1064_v36 = vrot.slane %v1047_v32, %v4339_v8  ;;  %v3796_v32 = vld [vmem:[#allocation18] ss:$16 sps:$4 sm:$0xff]  }
 0x1a1   :  { %1895 = vmatprep.subr.bf16.mxu1 %v3708_v37  ;;  %1936 = vmatprep.subr.bf16.mxu0 %v3711_v38 }
 0x1a4   :  { %1896 = vmatpush2.bf16.msra.mxu1 %v3706_v39  ;;  %1937 = vmatpush2.bf16.msra.mxu0 %v3709_v40 }
 0x1a5   :  { %1897 = vmatprep.subr.bf16.mxu1 %v3714_v41  ;;  %1938 = vmatprep.subr.bf16.mxu0 %v3717_v45 }
 0x1a8   :  { %1898 = vmatpush2.bf16.msra.mxu1 %v3712_v47  ;;  %1939 = vmatpush2.bf16.msra.mxu0 %v3715_v48 }
 0x1a9   :  { %1899 = vmatprep.subr.bf16.mxu1 %v3720_v49  ;;  %1940 = vmatprep.subr.bf16.mxu0 %v3723_v50 }
 0x1ac   :  { %1900 = vmatpush2.bf16.msra.mxu1 %v3718_v51  ;;  %1941 = vmatpush2.bf16.msra.mxu0 %v3721_v52 }
 0x1ad   :  { %1901 = vmatprep.subr.bf16.mxu1 %v3726_v53  ;;  %1942 = vmatprep.subr.bf16.mxu0 %v3729_v54 }
 0x1b0   :  { %1902 = vmatpush2.bf16.msra.mxu1 %v3724_v55  ;;  %1943 = vmatpush2.bf16.msra.mxu0 %v3727_v56 }
 0x1b1   :  { %1903 = vmatprep.subr.bf16.mxu1 %v3732_v57  ;;  %1944 = vmatprep.subr.bf16.mxu0 %v3735_v58 }
 0x1b4   :  { %1904 = vmatpush2.bf16.msra.mxu1 %v3730_v59  ;;  %1945 = vmatpush2.bf16.msra.mxu0 %v3733_v60 }
 0x1b5   :  { %1905 = vmatprep.subr.bf16.mxu1 %v3738_v62  ;;  %1946 = vmatprep.subr.bf16.mxu0 %v3741_v63  ;;  %v3754_v63 = vld [vmem:[#allocation18 + $0xe0] ss:$16 sps:$4 sm:$0xff]  }
 0x1b7   :  { %v908_v6 = vpop.f32.mrf.mxu0 }
 0x1b8   :  { %v975_v9 = vadd.f32 %v968_v0, %v908_v6  ;;  %1906 = vmatpush2.bf16.msra.mxu1 %v3736_v1  ;;  %1947 = vmatpush2.bf16.msra.mxu0 %v3739_v2  ;;  %v3757_v0 = vld [vmem:[#allocation18 + $0xe8] ss:$16 sps:$4 sm:$0xff]   ;;  %v3760_v6 = vld [vmem:[#allocation18 + $0xc0] ss:$16 sps:$4 sm:$0xff]  }
 0x1b9   :  { %v910_v10 = vpop.f32.mrf.mxu0  ;;  %1907 = vmatprep.subr.bf16.mxu1 %v3744_v24  ;;  %1948 = vmatprep.subr.bf16.mxu0 %v3747_v25  ;;  %v3786_v24 = vld [vmem:[#allocation18 + $0x44] ss:$16 sps:$4 sm:$0xff]   ;;  %v3789_v25 = vld [vmem:[#allocation18 + $0x4c] ss:$16 sps:$4 sm:$0xff]  }
 0x1ba   :  { %v977_v12 = vmul.f32 0.01, %v975_v9  ;;  %v976_v13 = vadd.f32 %v972_v4, %v910_v10  ;;  %v3765_v4 = vld [vmem:[#allocation18 + $0xcc] ss:$16 sps:$4 sm:$0xff]  }
 0x1bb   :  { %v912_v14 = vpop.f32.mrf.mxu0  ;;  %v3771_v10 = vld [vmem:[#allocation18 + $0xac] ss:$16 sps:$4 sm:$0xff]  }
 0x1bc   :  { %v979_v16 = vmax.f32 %v975_v9, %v977_v12  ;;  %v978_v17 = vmul.f32 0.01, %v976_v13  ;;  %1908 = vmatpush2.bf16.msra.mxu1 %v3742_v26  ;;  %1949 = vmatpush2.bf16.msra.mxu0 %v3745_v27  ;;  %v3768_v9 = vld [vmem:[#allocation18 + $0xa4] ss:$16 sps:$4 sm:$0xff]   ;;  %v3769_v12 = vld [vmem:[#allocation18 + $0xa8] ss:$16 sps:$4 sm:$0xff]  }
 0x1bd   :  { %v913_v19 = vpop.f32.mrf.mxu0  ;;  %1909 = vmatprep.subr.bf16.mxu1 %v3750_v18  ;;  %1950 = vmatprep.subr.bf16.mxu0 %v3753_v28  ;;  %v3777_v14 = vld [vmem:[#allocation18 + $0x8c] ss:$16 sps:$4 sm:$0xff]   ;;  %v3784_v26 = vld [vmem:[#allocation18 + $0x40] ss:$16 sps:$4 sm:$0xff]   ;;  %v3787_v27 = vld [vmem:[#allocation18 + $0x48] ss:$16 sps:$4 sm:$0xff]  }
 0x1be   :  { %v4353_v20 = vpack.c.bf16 %v979_v16, %v959_v11  ;;  %v980_v21 = vmax.f32 %v976_v13, %v978_v17  ;;  %v3766_v11 = vld [vmem:[#allocation18 + $0xa0] ss:$16 sps:$4 sm:$0xff]   ;;  %v3774_v13 = vld [vmem:[#allocation18 + $0x84] ss:$16 sps:$4 sm:$0xff]   ;;  %v3775_v16 = vld [vmem:[#allocation18 + $0x88] ss:$16 sps:$4 sm:$0xff]  }
 0x1bf   :  { %v3780_v17 = vld [vmem:[#allocation18 + $0x64] ss:$16 sps:$4 sm:$0xff]   ;;  %v3783_v19 = vld [vmem:[#allocation18 + $0x6c] ss:$16 sps:$4 sm:$0xff]  }
 0x1c0   :  { %v1986_v23 = vpack.c.bf16 %v980_v21, %v960_v15  ;;  %1910 = vmatpush2.bf16.msra.mxu1 %v3748_v29  ;;  %1951 = vmatpush2.bf16.msra.mxu0 %v3751_v30  ;;  %v3772_v15 = vld [vmem:[#allocation18 + $0x80] ss:$16 sps:$4 sm:$0xff]   ;;  %v3792_v18 = vld [vmem:[#allocation18 + $0x24] ss:$16 sps:$4 sm:$0xff]   ;;  %v3795_v28 = vld [vmem:[#allocation18 + $0x2c] ss:$16 sps:$4 sm:$0xff]  }
 0x1c1   :  { %2393 = vmatprep.subr.bf16.mxu1 %v3756_v22  ;;  %2436 = vmatprep.subr.bf16.mxu0 %v3759_v31  ;;  %v3778_v21 = vld [vmem:[#allocation18 + $0x60] ss:$16 sps:$4 sm:$0xff]   ;;  %v3793_v30 = vld [vmem:[#allocation18 + $0x28] ss:$16 sps:$4 sm:$0xff]   ;;  %v3798_v22 = vld [vmem:[#allocation18 + $0x4] ss:$16 sps:$4 sm:$0xff]  }
 0x1c2   :  { %v3790_v29 = vld [vmem:[#allocation18 + $0x20] ss:$16 sps:$4 sm:$0xff]   ;;  %v3801_v31 = vld [vmem:[#allocation18 + $0xc] ss:$16 sps:$4 sm:$0xff]  }
 0x243   :  { %v1423_v37 = vpop.f32.mrf.mxu1  ;;  %v1464_v38 = vpop.f32.mrf.mxu0 }
 0x244   :  { %v1424_v39 = vadd.f32 %v1423_v37, %v1052_v33  ;;  %v1465_v40 = vadd.f32 %v1464_v38, %v1060_v34  ;;  %v3799_v33 = vld [vmem:[#allocation18 + $0x8] ss:$16 sps:$4 sm:$0xff]   ;;  %v3804_v34 = vld [vmem:[#allocation18 + $0x1e4] ss:$16 sps:$4 sm:$0xff]  }
 0x245   :  { %v1425_v41 = vpop.f32.mrf.mxu1  ;;  %v1466_v45 = vpop.f32.mrf.mxu0  ;;  %v3805_v37 = vld [vmem:[#allocation18 + $0x1e8] ss:$16 sps:$4 sm:$0xff]   ;;  %v3810_v38 = vld [vmem:[#allocation18 + $0x1c4] ss:$16 sps:$4 sm:$0xff]  }
 0x246   :  { %v1471_v47 = vmul.f32 0.01, %v1424_v39  ;;  %v1473_v48 = vmul.f32 0.01, %v1465_v40  ;;  %v1426_v49 = vadd.f32 %v1425_v41, %v1056_v35  ;;  %v1467_v50 = vadd.f32 %v1466_v45, %v1064_v36  ;;  %v3807_v35 = vld [vmem:[#allocation18 + $0x1ec] ss:$16 sps:$4 sm:$0xff]  }
 0x247   :  { %v1427_v51 = vpop.f32.mrf.mxu1  ;;  %v1468_v52 = vpop.f32.mrf.mxu0  ;;  %v3802_v36 = vld [vmem:[#allocation18 + $0x1e0] ss:$16 sps:$4 sm:$0xff]   ;;  %v3811_v41 = vld [vmem:[#allocation18 + $0x1c8] ss:$16 sps:$4 sm:$0xff]   ;;  %v3816_v45 = vld [vmem:[#allocation18 + $0x1a4] ss:$16 sps:$4 sm:$0xff]  }
 0x248   :  { %v1472_v53 = vmul.f32 0.01, %v1426_v49  ;;  %v1474_v54 = vmul.f32 0.01, %v1467_v50  ;;  %v1475_v55 = vmax.f32 %v1424_v39, %v1471_v47  ;;  %v1477_v56 = vmax.f32 %v1465_v40, %v1473_v48  ;;  %v3813_v39 = vld [vmem:[#allocation18 + $0x1cc] ss:$16 sps:$4 sm:$0xff]  }
 0x249   :  { %v1428_v57 = vpop.f32.mrf.mxu1  ;;  %v1469_v58 = vpop.f32.mrf.mxu0  ;;  %v3808_v40 = vld [vmem:[#allocation18 + $0x1c0] ss:$16 sps:$4 sm:$0xff]   ;;  %v3819_v47 = vld [vmem:[#allocation18 + $0x1ac] ss:$16 sps:$4 sm:$0xff]  }
 0x24a   :  { %v1476_v59 = vmax.f32 %v1426_v49, %v1472_v53  ;;  %v1478_v60 = vmax.f32 %v1467_v50, %v1474_v54  ;;  %v1479_v1 = vpack.c.bf16 %v1475_v55, %v1475_v55  ;;  %v1481_v2 = vpack.c.bf16 %v1477_v56, %v1477_v56  ;;  %v3814_v48 = vld [vmem:[#allocation18 + $0x1a0] ss:$16 sps:$4 sm:$0xff]   ;;  %v3817_v49 = vld [vmem:[#allocation18 + $0x1a8] ss:$16 sps:$4 sm:$0xff]   ;;  %v3822_v50 = vld [vmem:[#allocation18 + $0x184] ss:$16 sps:$4 sm:$0xff]  }
 0x24b   :  { %v3825_v51 = vld [vmem:[#allocation18 + $0x18c] ss:$16 sps:$4 sm:$0xff]   ;;  %v3820_v52 = vld [vmem:[#allocation18 + $0x180] ss:$16 sps:$4 sm:$0xff]   ;;  %v3823_v53 = vld [vmem:[#allocation18 + $0x188] ss:$16 sps:$4 sm:$0xff]  }
 0x24c   :  { %v1480_v61 = vpack.c.bf16 %v1476_v59, %v1476_v59  ;;  %v1482_v62 = vpack.c.bf16 %v1478_v60, %v1478_v60  ;;  %v3828_v54 = vld [vmem:[#allocation18 + $0x164] ss:$16 sps:$4 sm:$0xff]   ;;  %v3831_v55 = vld [vmem:[#allocation18 + $0x16c] ss:$16 sps:$4 sm:$0xff]   ;;  %v3826_v56 = vld [vmem:[#allocation18 + $0x160] ss:$16 sps:$4 sm:$0xff]  }
 0x24d   :  { %v3829_v57 = vld [vmem:[#allocation18 + $0x168] ss:$16 sps:$4 sm:$0xff]   ;;  %v3834_v58 = vld [vmem:[#allocation18 + $0x144] ss:$16 sps:$4 sm:$0xff]   ;;  %v3837_v59 = vld [vmem:[#allocation18 + $0x14c] ss:$16 sps:$4 sm:$0xff]  }
 0x24e   :  { %1911 = vmatprep.mubr.bf16.mxu1 %v1480_v61  ;;  %1952 = vmatprep.mubr.bf16.mxu0 %v1482_v62  ;;  %v3832_v60 = vld [vmem:[#allocation18 + $0x140] ss:$16 sps:$4 sm:$0xff]   ;;  %v3835_v61 = vld [vmem:[#allocation18 + $0x148] ss:$16 sps:$4 sm:$0xff]   ;;  %v3840_v62 = vld [vmem:[#allocation18 + $0x124] ss:$16 sps:$4 sm:$0xff]  }
 0x24f   :  { %1912 = vmatmul.mubr.bf16.vlgmr.msra.gmra.mxu1 %v1479_v1  ;;  %1953 = vmatmul.mubr.bf16.vlgmr.msra.gmra.mxu0 %v1481_v2  ;;  %v3841_v1 = vld [vmem:[#allocation18 + $0x128] ss:$16 sps:$4 sm:$0xff]   ;;  %v3846_v2 = vld [vmem:[#allocation18 + $0x104] ss:$16 sps:$4 sm:$0xff]  }
 0x250   :  { %2394 = vmatpush1.bf16.msra.mxu1 %v3754_v63  ;;  %2437 = vmatpush1.bf16.msra.mxu0 %v3757_v0  ;;  %v3843_v63 = vld [vmem:[#allocation18 + $0x12c] ss:$16 sps:$4 sm:$0xff]   ;;  %v3838_v0 = vld [vmem:[#allocation18 + $0x120] ss:$16 sps:$4 sm:$0xff]  }
 0x251   :  { %2425 = vmatprep.mubr.bf16.mxu1 %v1986_v23  ;;  %2468 = vmatprep.mubr.bf16.mxu0 %v1986_v23  ;;  %v3781_v23 = vld [vmem:[#allocation18 + $0x68] ss:$16 sps:$4 sm:$0xff]  }
 0x252   :  { %2395 = vmatprep.subr.bf16.mxu1 %v3762_v3  ;;  %2438 = vmatprep.subr.bf16.mxu0 %v3765_v4  ;;  %v3849_v3 = vld [vmem:[#allocation18 + $0x10c] ss:$16 sps:$4 sm:$0xff]   ;;  %v3844_v4 = vld [vmem:[#allocation18 + $0x100] ss:$16 sps:$4 sm:$0xff]  }
 0x254   :  { %2396 = vmatpush1.bf16.msra.mxu1 %v3760_v6  ;;  %2439 = vmatpush1.bf16.msra.mxu0 %v3763_v7  ;;  %v3847_v6 = vld [vmem:[#allocation18 + $0x108] ss:$16 sps:$4 sm:$0xff]  }
 0x255   :  { %2397 = vmatprep.subr.bf16.mxu1 %v3768_v9  ;;  %2440 = vmatprep.subr.bf16.mxu0 %v3771_v10  ;;  %v3850_v7 = vld [vmem:[#allocation20 + $0x70] ss:$8 sps:$4 sm:$0xff]   ;;  %v3852_v9 = vld [vmem:[#allocation20 + $0x74] ss:$8 sps:$4 sm:$0xff]  }
 0x256   :  { %v3853_v10 = vld [vmem:[#allocation20 + $0x170] ss:$8 sps:$4 sm:$0xff]  }
 0x258   :  { %2398 = vmatpush1.bf16.msra.mxu1 %v3766_v11  ;;  %2441 = vmatpush1.bf16.msra.mxu0 %v3769_v12  ;;  %v3855_v11 = vld [vmem:[#allocation20 + $0x174] ss:$8 sps:$4 sm:$0xff]   ;;  %v3858_v12 = vld [vmem:[#allocation20 + $0x64] ss:$8 sps:$4 sm:$0xff]  }
 0x259   :  { %2399 = vmatprep.subr.bf16.mxu1 %v3774_v13  ;;  %2442 = vmatprep.subr.bf16.mxu0 %v3777_v14  ;;  %v3861_v13 = vld [vmem:[#allocation20 + $0x164] ss:$8 sps:$4 sm:$0xff]   ;;  %v3856_v14 = vld [vmem:[#allocation20 + $0x60] ss:$8 sps:$4 sm:$0xff]  }
 0x25c   :  { %2400 = vmatpush1.bf16.msra.mxu1 %v3772_v15  ;;  %2443 = vmatpush1.bf16.msra.mxu0 %v3775_v16  ;;  %v3859_v15 = vld [vmem:[#allocation20 + $0x160] ss:$8 sps:$4 sm:$0xff]   ;;  %v3864_v16 = vld [vmem:[#allocation20 + $0x54] ss:$8 sps:$4 sm:$0xff]  }
 0x25d   :  { %2401 = vmatprep.subr.bf16.mxu1 %v3780_v17  ;;  %2444 = vmatprep.subr.bf16.mxu0 %v3783_v19  ;;  %v3867_v17 = vld [vmem:[#allocation20 + $0x154] ss:$8 sps:$4 sm:$0xff]   ;;  %v3862_v19 = vld [vmem:[#allocation20 + $0x50] ss:$8 sps:$4 sm:$0xff]  }
 0x260   :  { %2402 = vmatpush1.bf16.msra.mxu1 %v3778_v21  ;;  %2445 = vmatpush1.bf16.msra.mxu0 %v3781_v23  ;;  %v3870_v21 = vld [vmem:[#allocation20 + $0x44] ss:$8 sps:$4 sm:$0xff]  }
 0x261   :  { %2403 = vmatprep.subr.bf16.mxu1 %v3786_v24  ;;  %2446 = vmatprep.subr.bf16.mxu0 %v3789_v25  ;;  %v3873_v23 = vld [vmem:[#allocation20 + $0x144] ss:$8 sps:$4 sm:$0xff]   ;;  %v3868_v24 = vld [vmem:[#allocation20 + $0x40] ss:$8 sps:$4 sm:$0xff]  }
 0x262   :  { %v3871_v25 = vld [vmem:[#allocation20 + $0x140] ss:$8 sps:$4 sm:$0xff]  }
 0x264   :  { %2404 = vmatpush1.bf16.msra.mxu1 %v3784_v26  ;;  %2447 = vmatpush1.bf16.msra.mxu0 %v3787_v27  ;;  %v3876_v26 = vld [vmem:[#allocation20 + $0x34] ss:$8 sps:$4 sm:$0xff]  }
 0x265   :  { %2405 = vmatprep.subr.bf16.mxu1 %v3792_v18  ;;  %2448 = vmatprep.subr.bf16.mxu0 %v3795_v28  ;;  %v3879_v27 = vld [vmem:[#allocation20 + $0x134] ss:$8 sps:$4 sm:$0xff]   ;;  %v3874_v18 = vld [vmem:[#allocation20 + $0x30] ss:$8 sps:$4 sm:$0xff]  }
 0x266   :  { %v3877_v28 = vld [vmem:[#allocation20 + $0x130] ss:$8 sps:$4 sm:$0xff]  }
 0x268   :  { %2406 = vmatpush1.bf16.msra.mxu1 %v3790_v29  ;;  %2449 = vmatpush1.bf16.msra.mxu0 %v3793_v30  ;;  %v3882_v29 = vld [vmem:[#allocation20 + $0x24] ss:$8 sps:$4 sm:$0xff]  }
 0x269   :  { %2407 = vmatprep.subr.bf16.mxu1 %v3798_v22  ;;  %2450 = vmatprep.subr.bf16.mxu0 %v3801_v31  ;;  %v3885_v30 = vld [vmem:[#allocation20 + $0x124] ss:$8 sps:$4 sm:$0xff]   ;;  %v3880_v22 = vld [vmem:[#allocation20 + $0x20] ss:$8 sps:$4 sm:$0xff]  }
 0x26a   :  { %v3883_v31 = vld [vmem:[#allocation20 + $0x120] ss:$8 sps:$4 sm:$0xff]  }
 0x26c   :  { %2408 = vmatpush1.bf16.msra.mxu1 %v3796_v32  ;;  %2451 = vmatpush1.bf16.msra.mxu0 %v3799_v33  ;;  %v3888_v32 = vld [vmem:[#allocation20 + $0x14] ss:$8 sps:$4 sm:$0xff]  }
 0x26d   :  { %2409 = vmatprep.subr.bf16.mxu1 %v3804_v34  ;;  %2452 = vmatprep.subr.bf16.mxu0 %v3807_v35  ;;  %v3891_v33 = vld [vmem:[#allocation20 + $0x114] ss:$8 sps:$4 sm:$0xff]   ;;  %v3886_v34 = vld [vmem:[#allocation20 + $0x10] ss:$8 sps:$4 sm:$0xff]  }
 0x26e   :  { %v3889_v35 = vld [vmem:[#allocation20 + $0x110] ss:$8 sps:$4 sm:$0xff]  }
 0x270   :  { %2410 = vmatpush2.bf16.msra.mxu1 %v3802_v36  ;;  %2453 = vmatpush2.bf16.msra.mxu0 %v3805_v37  ;;  %v3894_v36 = vld [vmem:[#allocation20 + $0x4] ss:$8 sps:$4 sm:$0xff]  }
 0x271   :  { %2411 = vmatprep.subr.bf16.mxu1 %v3810_v38  ;;  %2454 = vmatprep.subr.bf16.mxu0 %v3813_v39  ;;  %v3897_v37 = vld [vmem:[#allocation20 + $0x104] ss:$8 sps:$4 sm:$0xff]   ;;  %v3892_v38 = vld [vmem:[#allocation20] ss:$8 sps:$4 sm:$0xff]  }
 0x272   :  { %v3895_v39 = vld [vmem:[#allocation20 + $0x100] ss:$8 sps:$4 sm:$0xff]  }
 0x274   :  { %2412 = vmatpush2.bf16.msra.mxu1 %v3808_v40  ;;  %2455 = vmatpush2.bf16.msra.mxu0 %v3811_v41  ;;  %v3900_v40 = vld [vmem:[#allocation20 + $0xf4] ss:$8 sps:$4 sm:$0xff]  }
 0x275   :  { %2413 = vmatprep.subr.bf16.mxu1 %v3816_v45  ;;  %2456 = vmatprep.subr.bf16.mxu0 %v3819_v47  ;;  %v3903_v41 = vld [vmem:[#allocation20 + $0x1f4] ss:$8 sps:$4 sm:$0xff]   ;;  %v3898_v45 = vld [vmem:[#allocation20 + $0xf0] ss:$8 sps:$4 sm:$0xff]  }
 0x276   :  { %v3901_v47 = vld [vmem:[#allocation20 + $0x1f0] ss:$8 sps:$4 sm:$0xff]  }
 0x278   :  { %2414 = vmatpush2.bf16.msra.mxu1 %v3814_v48  ;;  %2457 = vmatpush2.bf16.msra.mxu0 %v3817_v49  ;;  %v3906_v48 = vld [vmem:[#allocation20 + $0xe4] ss:$8 sps:$4 sm:$0xff]  }
 0x279   :  { %2415 = vmatprep.subr.bf16.mxu1 %v3822_v50  ;;  %2458 = vmatprep.subr.bf16.mxu0 %v3825_v51  ;;  %v3909_v49 = vld [vmem:[#allocation20 + $0x1e4] ss:$8 sps:$4 sm:$0xff]   ;;  %v3904_v50 = vld [vmem:[#allocation20 + $0xe0] ss:$8 sps:$4 sm:$0xff]  }
 0x27a   :  { %v3907_v51 = vld [vmem:[#allocation20 + $0x1e0] ss:$8 sps:$4 sm:$0xff]  }
 0x27c   :  { %2416 = vmatpush2.bf16.msra.mxu1 %v3820_v52  ;;  %2459 = vmatpush2.bf16.msra.mxu0 %v3823_v53  ;;  %v3912_v52 = vld [vmem:[#allocation20 + $0xd4] ss:$8 sps:$4 sm:$0xff]  }
 0x27d   :  { %2417 = vmatprep.subr.bf16.mxu1 %v3828_v54  ;;  %2460 = vmatprep.subr.bf16.mxu0 %v3831_v55  ;;  %v3915_v53 = vld [vmem:[#allocation20 + $0x1d4] ss:$8 sps:$4 sm:$0xff]   ;;  %v3910_v54 = vld [vmem:[#allocation20 + $0xd0] ss:$8 sps:$4 sm:$0xff]  }
 0x27e   :  { %v3913_v55 = vld [vmem:[#allocation20 + $0x1d0] ss:$8 sps:$4 sm:$0xff]  }
 0x280   :  { %2418 = vmatpush2.bf16.msra.mxu1 %v3826_v56  ;;  %2461 = vmatpush2.bf16.msra.mxu0 %v3829_v57  ;;  %v3918_v56 = vld [vmem:[#allocation20 + $0xc4] ss:$8 sps:$4 sm:$0xff]  }
 0x281   :  { %2419 = vmatprep.subr.bf16.mxu1 %v3834_v58  ;;  %2462 = vmatprep.subr.bf16.mxu0 %v3837_v59  ;;  %v3921_v57 = vld [vmem:[#allocation20 + $0x1c4] ss:$8 sps:$4 sm:$0xff]   ;;  %v3916_v58 = vld [vmem:[#allocation20 + $0xc0] ss:$8 sps:$4 sm:$0xff]  }
 0x282   :  { %v3919_v59 = vld [vmem:[#allocation20 + $0x1c0] ss:$8 sps:$4 sm:$0xff]  }
 0x284   :  { %2420 = vmatpush2.bf16.msra.mxu1 %v3832_v60  ;;  %2463 = vmatpush2.bf16.msra.mxu0 %v3835_v61  ;;  %v3924_v60 = vld [vmem:[#allocation20 + $0xb4] ss:$8 sps:$4 sm:$0xff]  }
 0x285   :  { %2421 = vmatprep.subr.bf16.mxu1 %v3840_v62  ;;  %2464 = vmatprep.subr.bf16.mxu0 %v3843_v63  ;;  %v3927_v61 = vld [vmem:[#allocation20 + $0x1b4] ss:$8 sps:$4 sm:$0xff]   ;;  %v3922_v62 = vld [vmem:[#allocation20 + $0xb0] ss:$8 sps:$4 sm:$0xff]  }
 0x286   :  { %v3925_v63 = vld [vmem:[#allocation20 + $0x1b0] ss:$8 sps:$4 sm:$0xff]  }
 0x288   :  { %2422 = vmatpush2.bf16.msra.mxu1 %v3838_v0  ;;  %2465 = vmatpush2.bf16.msra.mxu0 %v3841_v1  ;;  %v3930_v0 = vld [vmem:[#allocation20 + $0xa4] ss:$8 sps:$4 sm:$0xff]  }
 0x289   :  { %2423 = vmatprep.subr.bf16.mxu1 %v3846_v2  ;;  %2466 = vmatprep.subr.bf16.mxu0 %v3849_v3  ;;  %v3933_v1 = vld [vmem:[#allocation20 + $0x1a4] ss:$8 sps:$4 sm:$0xff]   ;;  %v3928_v2 = vld [vmem:[#allocation20 + $0xa0] ss:$8 sps:$4 sm:$0xff]  }
 0x28a   :  { %v3931_v3 = vld [vmem:[#allocation20 + $0x1a0] ss:$8 sps:$4 sm:$0xff]  }
 0x28c   :  { %2424 = vmatpush2.bf16.msra.mxu1 %v3844_v4  ;;  %2467 = vmatpush2.bf16.msra.mxu0 %v3847_v6  ;;  %v3936_v4 = vld [vmem:[#allocation20 + $0x94] ss:$8 sps:$4 sm:$0xff]  }
 0x28d   :  { %2895 = vmatprep.subr.bf16.mxu1 %v3852_v9  ;;  %2938 = vmatprep.subr.bf16.mxu0 %v3855_v11  ;;  %v3939_v6 = vld [vmem:[#allocation20 + $0x194] ss:$8 sps:$4 sm:$0xff]   ;;  %v3937_v9 = vld [vmem:[#allocation20 + $0x190] ss:$8 sps:$4 sm:$0xff]   ;;  %v3945_v11 = vld [vmem:[#allocation20 + $0x184] ss:$8 sps:$4 sm:$0xff]  }
 0x28f   :  { %2426 = vmatmul.mubr.bf16.vlgmr.msra.gmra.mxu1 %v4353_v20  ;;  %2469 = vmatmul.mubr.bf16.vlgmr.msra.gmra.mxu0 %v4353_v20  ;;  %v3865_v20 = vld [vmem:[#allocation20 + $0x150] ss:$8 sps:$4 sm:$0xff]  }
 0x290   :  { %2896 = vmatpush1.bf16.msra.mxu1 %v3850_v7  ;;  %2939 = vmatpush1.bf16.msra.mxu0 %v3853_v10  ;;  %v3934_v7 = vld [vmem:[#allocation20 + $0x90] ss:$8 sps:$4 sm:$0xff]   ;;  %v3942_v10 = vld [vmem:[#allocation20 + $0x84] ss:$8 sps:$4 sm:$0xff]  }
 0x291   :  { %2897 = vmatprep.subr.bf16.mxu1 %v3858_v12  ;;  %2940 = vmatprep.subr.bf16.mxu0 %v3861_v13  ;;  %v3940_v12 = vld [vmem:[#allocation20 + $0x80] ss:$8 sps:$4 sm:$0xff]  }
 0x292   :  { %v3943_v13 = vld [vmem:[#allocation20 + $0x180] ss:$8 sps:$4 sm:$0xff]  }
 0x294   :  { %2898 = vmatpush1.bf16.msra.mxu1 %v3856_v14  ;;  %2941 = vmatpush1.bf16.msra.mxu0 %v3859_v15  ;;  %v1547_v14 = vld [vmem:[%s4409_s10] sm:$0x3] }
 0x295   :  { %2899 = vmatprep.subr.bf16.mxu1 %v3864_v16  ;;  %2942 = vmatprep.subr.bf16.mxu0 %v3867_v17  ;;  %v1552_v15 = vrot.slane %v1547_v14, %v4325_v44  ;;  %v1556_v16 = vrot.slane %v1547_v14, %v4331_v46 }
 0x298   :  { %2900 = vmatpush1.bf16.msra.mxu1 %v3862_v19  ;;  %2943 = vmatpush1.bf16.msra.mxu0 %v3865_v20 }
 0x299   :  { %2901 = vmatprep.subr.bf16.mxu1 %v3870_v21  ;;  %2944 = vmatprep.subr.bf16.mxu0 %v3873_v23 }
 0x29c   :  { %2902 = vmatpush1.bf16.msra.mxu1 %v3868_v24  ;;  %2945 = vmatpush1.bf16.msra.mxu0 %v3871_v25 }
 0x29d   :  { %2903 = vmatprep.subr.bf16.mxu1 %v3876_v26  ;;  %2946 = vmatprep.subr.bf16.mxu0 %v3879_v27 }
 0x2a0   :  { %2904 = vmatpush1.bf16.msra.mxu1 %v3874_v18  ;;  %2947 = vmatpush1.bf16.msra.mxu0 %v3877_v28  ;;  %v1965_v18 = vld [vmem:[%s4410_s11] sm:$0x3] }
 0x2a1   :  { %2905 = vmatprep.subr.bf16.mxu1 %v3882_v29  ;;  %2948 = vmatprep.subr.bf16.mxu0 %v3885_v30 }
 0x2a4   :  { %2906 = vmatpush1.bf16.msra.mxu1 %v3880_v22  ;;  %2949 = vmatpush1.bf16.msra.mxu0 %v3883_v31 }
 0x2a5   :  { %2907 = vmatprep.subr.bf16.mxu1 %v3888_v32  ;;  %2950 = vmatprep.subr.bf16.mxu0 %v3891_v33  ;;  %v1970_v33 = vrot.slane %v1965_v18, %v4325_v44 }
 0x2a8   :  { %2908 = vmatpush1.bf16.msra.mxu1 %v3886_v34  ;;  %2951 = vmatpush1.bf16.msra.mxu0 %v3889_v35  ;;  %v1974_v34 = vrot.slane %v1965_v18, %v4331_v46 }
 0x2a9   :  { %2909 = vmatprep.subr.bf16.mxu1 %v3894_v36  ;;  %2952 = vmatprep.subr.bf16.mxu0 %v3897_v37 }
 0x2ac   :  { %2910 = vmatpush1.bf16.msra.mxu1 %v3892_v38  ;;  %2953 = vmatpush1.bf16.msra.mxu0 %v3895_v39  ;;  %v2051_v39 = vld [vmem:[%s4412_s13] sm:$0xf] }
 0x2ad   :  { %2911 = vmatprep.subr.bf16.mxu1 %v3900_v40  ;;  %2954 = vmatprep.subr.bf16.mxu0 %v3903_v41  ;;  %v2056_v40 = vrot.slane %v2051_v39, %v4325_v44  ;;  %v2060_v41 = vrot.slane %v2051_v39, %v4331_v46 }
 0x2b0   :  { %2912 = vmatpush2.bf16.msra.mxu1 %v3898_v45  ;;  %2955 = vmatpush2.bf16.msra.mxu0 %v3901_v47  ;;  %v2068_v45 = vrot.slane %v2051_v39, %v4339_v8 }
 0x2b1   :  { %2913 = vmatprep.subr.bf16.mxu1 %v3906_v48  ;;  %2956 = vmatprep.subr.bf16.mxu0 %v3909_v49  ;;  %v2064_v48 = vrot.slane %v2051_v39, %v4336_v5 }
 0x2b4   :  { %2914 = vmatpush2.bf16.msra.mxu1 %v3904_v50  ;;  %2957 = vmatpush2.bf16.msra.mxu0 %v3907_v51 }
 0x2b5   :  { %2915 = vmatprep.subr.bf16.mxu1 %v3912_v52  ;;  %2958 = vmatprep.subr.bf16.mxu0 %v3915_v53 }
 0x2b8   :  { %2916 = vmatpush2.bf16.msra.mxu1 %v3910_v54  ;;  %2959 = vmatpush2.bf16.msra.mxu0 %v3913_v55 }
 0x2b9   :  { %2917 = vmatprep.subr.bf16.mxu1 %v3918_v56  ;;  %2960 = vmatprep.subr.bf16.mxu0 %v3921_v57 }
 0x2bc   :  { %2918 = vmatpush2.bf16.msra.mxu1 %v3916_v58  ;;  %2961 = vmatpush2.bf16.msra.mxu0 %v3919_v59 }
 0x2bd   :  { %2919 = vmatprep.subr.bf16.mxu1 %v3924_v60  ;;  %2962 = vmatprep.subr.bf16.mxu0 %v3927_v61 }
 0x2c0   :  { %2920 = vmatpush2.bf16.msra.mxu1 %v3922_v62  ;;  %2963 = vmatpush2.bf16.msra.mxu0 %v3925_v63 }
 0x2c1   :  { %2921 = vmatprep.subr.bf16.mxu1 %v3930_v0  ;;  %2964 = vmatprep.subr.bf16.mxu0 %v3933_v1 }
 0x2c4   :  { %2922 = vmatpush2.bf16.msra.mxu1 %v3928_v2  ;;  %2965 = vmatpush2.bf16.msra.mxu0 %v3931_v3 }
 0x2c5   :  { %2923 = vmatprep.subr.bf16.mxu1 %v3936_v4  ;;  %2966 = vmatprep.subr.bf16.mxu0 %v3939_v6 }
 0x2c8   :  { %2924 = vmatpush2.bf16.msra.mxu1 %v3934_v7  ;;  %2967 = vmatpush2.bf16.msra.mxu0 %v3937_v9 }
 0x2c9   :  { %2925 = vmatprep.subr.bf16.mxu1 %v3942_v10  ;;  %2968 = vmatprep.subr.bf16.mxu0 %v3945_v11 }
 0x2cc   :  { %2926 = vmatpush2.bf16.msra.mxu1 %v3940_v12  ;;  %2969 = vmatpush2.bf16.msra.mxu0 %v3943_v13 }
 0x30f   :  { %v1913_v17 = vpop.f32.mrf.mxu1  ;;  %v1954_v19 = vpop.f32.mrf.mxu0 }
 0x310   :  { %v1914_v20 = vadd.f32 %v1913_v17, %v1552_v15 }
 0x311   :  { %v1915_v21 = vpop.f32.mrf.mxu1  ;;  %v1956_v23 = vpop.f32.mrf.mxu0 }
 0x312   :  { %v1955_v24 = vadd.f32 %v1954_v19, %v1914_v20  ;;  %v1916_v25 = vadd.f32 %v1915_v21, %v1556_v16  ;;  %v2563_v21 = vld [vmem:[%s4414_s15] sm:$0x3]  ;;  %s3402_s15 = sld [smem:[#allocation4 + $0x2]] }
 0x313   :  { %v1917_v26 = vpop.f32.mrf.mxu1  ;;  %v1958_v27 = vpop.f32.mrf.mxu0 }
 0x314   :  { %v1961_v28 = vmul.f32 0.01, %v1955_v24  ;;  %v1957_v29 = vadd.f32 %v1956_v23, %v1916_v25  ;;  %v2568_v23 = vrot.slane %v2563_v21, %v4325_v44 }
 0x315   :  { %v1918_v30 = vpop.f32.mrf.mxu1  ;;  %v1959_v22 = vpop.f32.mrf.mxu0 }
 0x316   :  { %v1963_v31 = vmax.f32 %v1955_v24, %v1961_v28  ;;  %v1962_v32 = vmul.f32 0.01, %v1957_v29  ;;  %v2572_v24 = vrot.slane %v2563_v21, %v4331_v46  ;;  %v2989_v22 = vld [vmem:[%s4415_s16] sm:$0x3]  ;;  %s922_s16 = sld [smem:[#allocation4]] }
 0x317   :  { %v2998_v39 = vrot.slane %v2989_v22, %v4331_v46 }
 0x318   :  { %v1964_v35 = vmax.f32 %v1957_v29, %v1962_v32  ;;  %v1977_v36 = vmul.f32 %v1970_v33, %v1963_v31  ;;  %v3007_v46 = vstv %s3402_s15 }
 0x31a   :  { %v1978_v37 = vmul.f32 %v1974_v34, %v1964_v35 }
 0x31c   :  { %v4374_v38 = vadd.f32 %v1978_v37, %v1977_v36  ;;  %v2994_v37 = vrot.slane %v2989_v22, %v4325_v44 }
 0x34f   :  { %v2427_v47 = vpop.f32.mrf.mxu1  ;;  %v2470_v49 = vpop.f32.mrf.mxu0 }
 0x350   :  { %v2428_v50 = vadd.f32 %v2427_v47, %v2056_v40  ;;  %v2471_v55 = vadd.f32 %v2470_v49, %v2064_v48 }
 0x351   :  { %v2429_v51 = vpop.f32.mrf.mxu1  ;;  %v2472_v52 = vpop.f32.mrf.mxu0 }
 0x352   :  { %v2430_v53 = vadd.f32 %v2429_v51, %v2060_v41  ;;  %v2473_v54 = vadd.f32 %v2472_v52, %v2068_v45  ;;  %v2479_v58 = vmul.f32 0.01, %v2428_v50  ;;  %v2481_v2 = vmul.f32 0.01, %v2471_v55 }
 0x353   :  { %v2431_v56 = vpop.f32.mrf.mxu1  ;;  %v2474_v57 = vpop.f32.mrf.mxu0 }
 0x354   :  { %v2432_v59 = vadd.f32 %v2431_v56, %v2056_v40  ;;  %v2475_v60 = vadd.f32 %v2474_v57, %v2064_v48  ;;  %v2480_v63 = vmul.f32 0.01, %v2430_v53  ;;  %v2482_v0 = vmul.f32 0.01, %v2473_v54 }
 0x355   :  { %v2433_v61 = vpop.f32.mrf.mxu1  ;;  %v2476_v62 = vpop.f32.mrf.mxu0  ;;  %v2487_v14 = vmax.f32 %v2428_v50, %v2479_v58  ;;  %v2489_v15 = vmax.f32 %v2471_v55, %v2481_v2 }
 0x356   :  { %v2434_v8 = vadd.f32 %v2433_v61, %v2060_v41  ;;  %v2477_v1 = vadd.f32 %v2476_v62, %v2068_v45  ;;  %v2483_v5 = vmul.f32 0.01, %v2432_v59  ;;  %v2485_v3 = vmul.f32 0.01, %v2475_v60 }
 0x357   :  { %v2488_v10 = vmax.f32 %v2430_v53, %v2480_v63  ;;  %v2490_v11 = vmax.f32 %v2473_v54, %v2482_v0  ;;  %v3015_v62 = vstv %s922_s16  ;;  %v1983_v63 = vstv %s3273_s1 }
 0x358   :  { %v2484_v4 = vmul.f32 0.01, %v2434_v8  ;;  %v2486_v6 = vmul.f32 0.01, %v2477_v1  ;;  %v2491_v7 = vmax.f32 %v2432_v59, %v2483_v5  ;;  %v2493_v9 = vmax.f32 %v2475_v60, %v2485_v3 }
 0x359   :  { %v3021_v0 = vand.u32 127, %v929_v42 }
 0x35a   :  { %v2492_v12 = vmax.f32 %v2434_v8, %v2484_v4  ;;  %v2494_v13 = vmax.f32 %v2477_v1, %v2486_v6  ;;  %v2495_v19 = vpack.c.bf16 %v2491_v7, %v2487_v14  ;;  %v2497_v20 = vpack.c.bf16 %v2493_v9, %v2489_v15 }
 0x35b   :  { %v3024_v6 = vsub.s32 %v3021_v0, %v4322_v43 }
 0x35c   :  { %v2496_v16 = vpack.c.bf16 %v2492_v12, %v2488_v10  ;;  %v2498_v17 = vpack.c.bf16 %v2494_v13, %v2490_v11 }
 0x35e   :  { %2927 = vmatprep.mubr.bf16.mxu1 %v2496_v16  ;;  %2970 = vmatprep.mubr.bf16.mxu0 %v2498_v17 }
 0x35f   :  { %2928 = vmatmul.mubr.bf16.vlgmr.msra.gmra.mxu1 %v2495_v19  ;;  %2971 = vmatmul.mubr.bf16.vlgmr.msra.gmra.mxu0 %v2497_v20 }
 0x41f   :  { %v2929_v25 = vpop.f32.mrf.mxu1  ;;  %v2972_v26 = vpop.f32.mrf.mxu0 }
 0x420   :  { %v2930_v27 = vadd.f32 %v2929_v25, %v2568_v23 }
 0x421   :  { %v2931_v18 = vpop.f32.mrf.mxu1  ;;  %v2974_v28 = vpop.f32.mrf.mxu0 }
 0x422   :  { %v2973_v29 = vadd.f32 %v2972_v26, %v2930_v27  ;;  %v2932_v30 = vadd.f32 %v2931_v18, %v2572_v24 }
 0x423   :  { %v2933_v31 = vpop.f32.mrf.mxu1  ;;  %v2976_v32 = vpop.f32.mrf.mxu0 }
 0x424   :  { %v2981_v33 = vmul.f32 0.01, %v2973_v29  ;;  %v2975_v34 = vadd.f32 %v2974_v28, %v2932_v30  ;;  %v2934_v35 = vadd.f32 %v2933_v31, %v2568_v23 }
 0x425   :  { %v2935_v36 = vpop.f32.mrf.mxu1  ;;  %v2978_v48 = vpop.f32.mrf.mxu0 }
 0x426   :  { %v2985_v40 = vmax.f32 %v2973_v29, %v2981_v33  ;;  %v2982_v41 = vmul.f32 0.01, %v2975_v34  ;;  %v2977_v45 = vadd.f32 %v2976_v32, %v2934_v35  ;;  %v2936_v47 = vadd.f32 %v2935_v36, %v2572_v24 }
 0x428   :  { %v2986_v49 = vmax.f32 %v2975_v34, %v2982_v41  ;;  %v2983_v50 = vmul.f32 0.01, %v2977_v45  ;;  %v2979_v51 = vadd.f32 %v2978_v48, %v2936_v47  ;;  %v3001_v54 = vmul.f32 %v2994_v37, %v2985_v40 }
 0x42a   :  { %v2987_v52 = vmax.f32 %v2977_v45, %v2983_v50  ;;  %v2984_v53 = vmul.f32 0.01, %v2979_v51  ;;  %v3002_v55 = vmul.f32 %v2998_v39, %v2986_v49 }
 0x42c   :  { %v2988_v56 = vmax.f32 %v2979_v51, %v2984_v53  ;;  %v3003_v57 = vadd.f32 %v3002_v55, %v3001_v54  ;;  %v3009_v58 = vmul.f32 %v2994_v37, %v2987_v52 }
 0x42e   :  { %3004 = vadd.xlane.f32.xlu1 %v3003_v57  ;;  %v3010_v59 = vmul.f32 %v2998_v39, %v2988_v56 }
 0x430   :  { %v3011_v44 = vadd.f32 %v3010_v59, %v3009_v58 }
 0x432   :  { %3012 = vadd.xlane.f32.xlu0 %v3011_v44 }
 0x436   :  { %1980 = vadd.xlane.f32.xlu0 %v4374_v38 }
 0x4b7   :  { %v3005_v8 = vpop.xlane.xlu1 %3004 }
 0x4b8   :  { %v3008_v3 = vadd.f32 %v3007_v46, %v3005_v8 }
 0x4bb   :  { %v3013_v60 = vpop.xlane.xlu0 %3012 }
 0x4bc   :  { %v3014_v61 = vadd.f32 %v3013_v60, %v3007_v46 }
 0x4be   :  { %v3016_v2 = vmul.f32 %v3015_v62, %v3014_v61 }
 0x4bf   :  { %v1981_v1 = vpop.xlane.xlu0 %1980 }
 0x4c0   :  { %v1984_v5 = vadd.f32 %v1983_v63, %v1981_v1 }
 0x4c2   :  { %v3017_v4 = vadd.f32 %v3016_v2, %v1984_v5 }
 0x4c4   :  { %v3018_v38 = vsub.f32 %v3017_v4, %v3008_v3 }
 0x4c6   :  { %v3025_v7 = vrot.slane %v3018_v38, %v3024_v6 }
 0x4c8   :  { %3028 = vst.msk [vmem:[#allocation21] sm:$0x1] %vm3027_vm0, %v3025_v7 }
 0x4c9   :  { %4145 = shalt.err (!%p4142_p7)
}
 0x4ca   :  { %3038 = dma.vmem_to_hbm [thread:$0]  %s3036_s21, 16, %s4416_s17, [#allocation6]  }
 0x4cb   :  { %4166 = dma.done.wait [#allocation6], 16  }
 0x4cc   :  { %4167 = vsyncadd [#allocation6], 4294967280 }
 0x4cd   :  { %3042 = vsyncpa [#allocation5], 1 }
 0x4ce   :  { %3043 = vsyncpa [#allocation10], 1 }
 0x4cf   :  { %3044 = vsyncpa [#allocation13], 1 }
 0x4d0   :  { %3045 = vsyncpa [#allocation16], 1 }
 0x4d1   :  { %3046 = vsyncpa [#allocation19], 1 }
 0x4d2   :  { %3047 = vsyncpa [#allocation6], 1 }
 0x4d3   :  { %3048 = vsyncpa [#allocation7], 1 }

</bundles_post_ra>
